<compile_context>
chip_gen: v7x
topology: tpu7x:2x2x1
jax: 0.10.0
libtpu: 0.0.40
codegen_flags: <defaults>
</compile_context>

<pallas_src>
import functools

import jax
import jax.numpy as jnp
import numpy as np
from jax import lax
from jax.experimental import pallas as pl
from jax.experimental.pallas import tpu as pltpu

_NEG = -1e30  # softmax pad-lane bias (exp underflows to exactly 0.0 in f32)


def _round_up(x, m):
    return (x + m - 1) // m * m


# ----------------------------------------------------------------------------
# Static layout shared by pack_params and the forward wrapper
# ----------------------------------------------------------------------------
def _layout(jobs_dim, machine_dim, emb_dim, n_action):
    H = emb_dim
    G = 4 * H
    in_dim = jobs_dim + machine_dim
    in_dim_p = _round_up(in_dim, 8)
    W = _round_up(max(2 * emb_dim, G, max(n_action, 128)), 128)  # lane width
    row_counts = (
        ("w_emb", in_dim_p),            # block-diag [wj | 0 ; 0 | wm]
        ("wih0", W),                    # K padded to W to match emb [S, W]
        ("whh0", _round_up(H, 8)),
        ("w1f", _round_up(2 * H, 8)),   # [wih1 ; whh1] fused
        ("wa1", _round_up(H, 8)),
        ("wa2", W),                     # K padded to W to match z1 [S, W]
        ("wa3", W),
    )
    offs, r = {}, 0
    for name, n in row_counts:
        offs[name] = r
        r += n
    return dict(H=H, G=G, in_dim=in_dim, in_dim_p=in_dim_p, W=W,
                offs=offs, total_rows=r)


# ----------------------------------------------------------------------------
# One-time parameter packing (re-run only when params change)
# ----------------------------------------------------------------------------
def pack_params(params):
    """Pack all 19 parameter arrays into (w_pack [R, W], b_pack [8, W]).

    Invariants the kernel relies on:
      * every pad row / pad column of a weight block is exactly 0,
      * ba3 pad lanes are exactly -1e30 (softmax pad-lane trick),
      * the sigmoid 0.5 pre-scale is baked into the i/f/o gate columns of the
        LSTM weights and biases (sigmoid(z) = 0.5*tanh(z/2) + 0.5).
    """
    f32 = jnp.float32
    jobs_dim, E = params["wj"].shape
    machine_dim = params["wm"].shape[0]
    A = params["wa3"].shape[1]
    L = _layout(jobs_dim, machine_dim, E, A)
    H, G, W = L["H"], L["G"], L["W"]

    def prescale(w):
        # scale i, f, o gate columns (PyTorch order i,f,g,o) by 0.5
        w = jnp.asarray(w, f32)
        w = w.at[..., 0:2 * H].multiply(0.5)
        w = w.at[..., 3 * H:4 * H].multiply(0.5)
        return w

    # Block-diagonal embedding weight: x @ w_emb == concat(jobs@wj, mach@wm).
    w_emb = jnp.zeros((L["in_dim"], 2 * E), f32)
    w_emb = w_emb.at[:jobs_dim, :E].set(params["wj"].astype(f32))
    w_emb = w_emb.at[jobs_dim:, E:].set(params["wm"].astype(f32))

    blocks = {
        "w_emb": w_emb,
        "wih0": prescale(params["wih0"]),
        "whh0": prescale(params["whh0"]),
        "w1f": prescale(jnp.concatenate([params["wih1"], params["whh1"]], axis=0)),
        "wa1": jnp.asarray(params["wa1"], f32),
        "wa2": jnp.asarray(params["wa2"], f32),
        "wa3": jnp.asarray(params["wa3"], f32),
    }

    w_pack = jnp.zeros((L["total_rows"], W), f32)
    for name, blk in blocks.items():
        r = L["offs"][name]
        w_pack = w_pack.at[r:r + blk.shape[0], :blk.shape[1]].set(blk)

    b_pack = jnp.zeros((8, W), f32)
    b_pack = b_pack.at[0, :2 * E].set(
        jnp.concatenate([params["bj"], params["bm"]]).astype(f32))
    b_pack = b_pack.at[1, :G].set(prescale(params["b0"]))
    b_pack = b_pack.at[2, :G].set(prescale(params["b1"]))
    b_pack = b_pack.at[3, :E].set(params["ba1"].astype(f32))
    b_pack = b_pack.at[4, :E].set(params["ba2"].astype(f32))
    ba3_row = jnp.full((W,), _NEG, f32).at[:A].set(params["ba3"].astype(f32))
    b_pack = b_pack.at[5, :].set(ba3_row)
    return w_pack, b_pack


# ----------------------------------------------------------------------------
# Kernel
# ----------------------------------------------------------------------------
def _make_actor_kernel(use_tanh, S, H, in_dim_p, W, offs):
    act = jnp.tanh if use_tanh else (lambda z: jnp.maximum(z, 0.0))

    def kernel(x_ref, wp_ref, bp_ref, out_ref):
        # ---- static, 8-row-aligned, full-lane-width views into the slabs ----
        w_emb = wp_ref[offs["w_emb"]:offs["w_emb"] + in_dim_p, :]
        wih0 = wp_ref[offs["wih0"]:offs["wih0"] + W, :]
        whh0 = wp_ref[offs["whh0"]:offs["whh0"] + H, :]
        w1f = wp_ref[offs["w1f"]:offs["w1f"] + 2 * H, :]
        wa1 = wp_ref[offs["wa1"]:offs["wa1"] + H, :]
        wa2 = wp_ref[offs["wa2"]:offs["wa2"] + W, :]
        wa3 = wp_ref[offs["wa3"]:offs["wa3"] + W, :]

        b_emb = bp_ref[0:1, :]
        b0 = bp_ref[1:2, :]
        b1 = bp_ref[2:3, :]
        ba1 = bp_ref[3:4, :]
        ba2 = bp_ref[4:5, :]
        ba3 = bp_ref[5:6, :]

        # ---- embeddings + layer-0 input projection (bulk MXU, lane-dense) ---
        x = x_ref[...]
        emb = jnp.dot(x, w_emb, preferred_element_type=jnp.float32) + b_emb   # [S, W]
        gx0 = jnp.dot(emb, wih0, preferred_element_type=jnp.float32) + b0     # [S, W]

        def cell(g, c):
            # g: [1, W] gate pre-activation (PyTorch order i,f,g,o).  The 0.5
            # sigmoid pre-scale is already baked into the i/f/o weight/bias
            # columns, so:  sigmoid(z) = 0.5*tanh(z/2) + 0.5  costs ONE tanh
            # over the full vreg; the g gate lanes give tanh(z) directly.
            t_all = jnp.tanh(g)
            s_all = 0.5 * t_all + 0.5
            i_g = s_all[:, 0:H]
            f_g = s_all[:, H:2 * H]
            g_g = t_all[:, 2 * H:3 * H]
            o_g = s_all[:, 3 * H:4 * H]
            c_new = f_g * c + i_g * g_g
            h_new = o_g * jnp.tanh(c_new)
            return h_new, c_new

        zero_h = jnp.zeros((1, H), jnp.float32)
        h0, c0 = zero_h, zero_h
        h1, c1 = zero_h, zero_h
        h1_rows = []

        # ---- fused wavefront recurrence (fully unrolled, S is static) --------
        # Iteration t runs layer-0 step t and layer-1 step t-1 (layer 1 only
        # needs h0[t-1]); all h/c state stays in vregs.
        for t in range(S + 1):
            h0_new = c0_new = None
            if t < S:
                g0 = gx0[t:t + 1, :] + jnp.dot(
                    h0, whh0, preferred_element_type=jnp.float32)
                h0_new, c0_new = cell(g0, c0)
            if t >= 1:
                # h0 still holds h0[t-1] here; single fused MXU op for wih1+whh1.
                h01 = jnp.concatenate([h0, h1], axis=1)                 # [1, 2H]
                g1 = jnp.dot(h01, w1f, preferred_element_type=jnp.float32) + b1
                h1, c1 = cell(g1, c1)
                h1_rows.append(h1)
            if t < S:
                h0, c0 = h0_new, c0_new

        # ---- MLP head + softmax over a lane-dense [S, W] slab ---------------
        h1s = jnp.concatenate(h1_rows, axis=0)                          # [S, H]
        z = act(jnp.dot(h1s, wa1, preferred_element_type=jnp.float32) + ba1)
        z = act(jnp.dot(z, wa2, preferred_element_type=jnp.float32) + ba2)
        # wa3 pad columns are 0 and ba3 pad lanes are -1e30, so pad lanes get
        # logit -1e30 -> exp == 0 and do not perturb the softmax.
        logits = jnp.dot(z, wa3, preferred_element_type=jnp.float32) + ba3
        m = jnp.max(logits, axis=-1, keepdims=True)
        e = jnp.exp(logits - m)
        out_ref[...] = e / jnp.sum(e, axis=-1, keepdims=True)

    return kernel


# ----------------------------------------------------------------------------
# Forward: takes the pre-packed slabs, only packs the per-call input x.
# ----------------------------------------------------------------------------
@functools.partial(jax.jit, static_argnames=("emb_dim", "n_action", "use_tanh"))
def actor_lstm_forward(jobs, mach, w_pack, b_pack, *, emb_dim, n_action,
                       use_tanh=True):
    """jobs: [S, jobs_dim], mach: [S, machine_dim] -> a_prob: [1, S, n_action]."""
    f32 = jnp.float32
    S, jobs_dim = jobs.shape
    machine_dim = mach.shape[1]
    L = _layout(jobs_dim, machine_dim, emb_dim, n_action)
    in_dim, in_dim_p, W = L["in_dim"], L["in_dim_p"], L["W"]

    x = jnp.concatenate([jobs.astype(f32), mach.astype(f32)], axis=1)
    if in_dim_p != in_dim:
        x = jnp.pad(x, ((0, 0), (0, in_dim_p - in_dim)))

    vmem = lambda: pl.BlockSpec(memory_space=pltpu.MemorySpace.VMEM)
    out = pl.pallas_call(
        _make_actor_kernel(use_tanh, S, L["H"], in_dim_p, W, L["offs"]),
        out_shape=jax.ShapeDtypeStruct((S, W), jnp.float32),
        in_specs=[vmem(), vmem(), vmem()],
        out_specs=vmem(),
    )(x, w_pack, b_pack)

    # Drop lane padding, add torch's unsqueeze(0) batch dim.
    return out[None, :, :n_action]


# ----------------------------------------------------------------------------
# Pure-JAX reference (same math, used only for the correctness check)
# ----------------------------------------------------------------------------
def reference_forward(jobs, mach, params, use_tanh=True):
    act = jnp.tanh if use_tanh else (lambda z: jnp.maximum(z, 0.0))
    hp = lax.Precision.HIGHEST
    sig = lambda z: 1.0 / (1.0 + jnp.exp(-z))

    je = jnp.dot(jobs, params["wj"], precision=hp) + params["bj"]
    me = jnp.dot(mach, params["wm"], precision=hp) + params["bm"]
    x = jnp.concatenate([je, me], axis=1)

    def lstm(x_seq, wih, whh, b):
        H = whh.shape[0]
        gx = jnp.dot(x_seq, wih, precision=hp) + b

        def step(carry, g_t):
            h, c = carry
            g = g_t + jnp.dot(h, whh, precision=hp)
            i = sig(g[0:H]); f = sig(g[H:2 * H])
            gg = jnp.tanh(g[2 * H:3 * H]); o = sig(g[3 * H:4 * H])
            c = f * c + i * gg
            h = o * jnp.tanh(c)
            return (h, c), h

        _, hs = lax.scan(step, (jnp.zeros((H,)), jnp.zeros((H,))), gx)
        return hs

    h0 = lstm(x, params["wih0"], params["whh0"], params["b0"])
    h1 = lstm(h0, params["wih1"], params["whh1"], params["b1"])
    z = act(jnp.dot(h1, params["wa1"], precision=hp) + params["ba1"])
    z = act(jnp.dot(z, params["wa2"], precision=hp) + params["ba2"])
    logits = jnp.dot(z, params["wa3"], precision=hp) + params["ba3"]
    m = jnp.max(logits, axis=-1, keepdims=True)
    e = jnp.exp(logits - m)
    return (e / jnp.sum(e, axis=-1, keepdims=True))[None]


# ----------------------------------------------------------------------------
# Deterministic parameter init + demo
# ----------------------------------------------------------------------------
def init_params(key, jobs_dim, machine_dim, emb_dim, n_action):
    # Weights stored in "x @ W" (in_features, out_features) layout.
    ks = iter(jax.random.split(key, 32))
    u = lambda k, shape, s=0.2: jax.random.uniform(k, shape, jnp.float32, -s, s)
    H = emb_dim
    return {
        "wj": u(next(ks), (jobs_dim, emb_dim)),    "bj": u(next(ks), (emb_dim,)),
        "wm": u(next(ks), (machine_dim, emb_dim)), "bm": u(next(ks), (emb_dim,)),
        # LSTM layer 0: input 2*emb_dim, gate order (i, f, g, o), bias = b_ih + b_hh
        "wih0": u(next(ks), (2 * emb_dim, 4 * H)), "whh0": u(next(ks), (H, 4 * H)),
        "b0": u(next(ks), (4 * H,)),
        # LSTM layer 1: input emb_dim
        "wih1": u(next(ks), (H, 4 * H)),           "whh1": u(next(ks), (H, 4 * H)),
        "b1": u(next(ks), (4 * H,)),
        # MLP head
        "wa1": u(next(ks), (emb_dim, emb_dim)), "ba1": u(next(ks), (emb_dim,)),
        "wa2": u(next(ks), (emb_dim, emb_dim)), "ba2": u(next(ks), (emb_dim,)),
        "wa3": u(next(ks), (emb_dim, n_action)), "ba3": u(next(ks), (n_action,)),
    }


if __name__ == "__main__":
    # args: jobs_embedding_dim=10, machine_embedding_dim=6, embedding_dim=32,
    #       n_action=5, use_tanh=1; sequence length S=8 (rows of state[0]/state[1]).
    S, JOBS_DIM, MACH_DIM, EMB, N_ACTION = 8, 10, 6, 32, 5
    USE_TANH = True

    key = jax.random.PRNGKey(0)
    k_par, k_jobs, k_mach = jax.random.split(key, 3)
    params = init_params(k_par, JOBS_DIM, MACH_DIM, EMB, N_ACTION)

    # state = (jobsInfor, machineInfor)
    jobs = jax.random.normal(k_jobs, (S, JOBS_DIM), jnp.float32)
    mach = jax.random.normal(k_mach, (S, MACH_DIM), jnp.float32)

    # One-time parameter packing (cached by the caller; re-run only when the
    # policy parameters are updated).
    w_pack, b_pack = jax.block_until_ready(pack_params(params))

    a_prob = jax.block_until_ready(
        actor_lstm_forward(jobs, mach, w_pack, b_pack,
                           emb_dim=EMB, n_action=N_ACTION, use_tanh=USE_TANH))

    ref = np.asarray(reference_forward(jobs, mach, params, use_tanh=USE_TANH))
    assert a_prob.shape == (1, S, N_ACTION), a_prob.shape
    assert np.allclose(np.asarray(a_prob), ref, atol=1e-3, rtol=1e-3)
    assert np.allclose(np.asarray(a_prob).sum(-1), 1.0, atol=1e-4)

    print("KERNEL_OK")
</pallas_src>

<mosaic_0001>
module attributes {stable_mosaic.version = 11 : i64} {
  func.func @kernel(%arg0: memref<8x16xf32, #tpu.memory_space<vmem>>, %arg1: memref<528x128xf32, #tpu.memory_space<vmem>>, %arg2: memref<8x128xf32, #tpu.memory_space<vmem>>, %arg3: memref<8x128xf32, #tpu.memory_space<vmem>>) attributes {dimension_semantics = [], scalar_prefetch = 0 : i64, scratch_operands = 0 : i64, tpu.core_type = #tpu.core_type<tc>} {
    %c0 = arith.constant 0 : index
    %c0_0 = arith.constant 0 : index
    %0 = vector.load %arg1[%c0, %c0_0] : memref<528x128xf32, #tpu.memory_space<vmem>>, vector<16x128xf32>
    %c16 = arith.constant 16 : index
    %c0_1 = arith.constant 0 : index
    %1 = vector.load %arg1[%c16, %c0_1] : memref<528x128xf32, #tpu.memory_space<vmem>>, vector<128x128xf32>
    %c144 = arith.constant 144 : index
    %c0_2 = arith.constant 0 : index
    %2 = vector.load %arg1[%c144, %c0_2] : memref<528x128xf32, #tpu.memory_space<vmem>>, vector<32x128xf32>
    %c176 = arith.constant 176 : index
    %c0_3 = arith.constant 0 : index
    %3 = vector.load %arg1[%c176, %c0_3] : memref<528x128xf32, #tpu.memory_space<vmem>>, vector<64x128xf32>
    %c240 = arith.constant 240 : index
    %c0_4 = arith.constant 0 : index
    %4 = vector.load %arg1[%c240, %c0_4] : memref<528x128xf32, #tpu.memory_space<vmem>>, vector<32x128xf32>
    %c272 = arith.constant 272 : index
    %c0_5 = arith.constant 0 : index
    %5 = vector.load %arg1[%c272, %c0_5] : memref<528x128xf32, #tpu.memory_space<vmem>>, vector<128x128xf32>
    %c400 = arith.constant 400 : index
    %c0_6 = arith.constant 0 : index
    %6 = vector.load %arg1[%c400, %c0_6] : memref<528x128xf32, #tpu.memory_space<vmem>>, vector<128x128xf32>
    %c0_7 = arith.constant 0 : index
    %c0_8 = arith.constant 0 : index
    %7 = vector.load %arg2[%c0_7, %c0_8] : memref<8x128xf32, #tpu.memory_space<vmem>>, vector<1x128xf32>
    %c1 = arith.constant 1 : index
    %c0_9 = arith.constant 0 : index
    %8 = vector.load %arg2[%c1, %c0_9] : memref<8x128xf32, #tpu.memory_space<vmem>>, vector<1x128xf32>
    %c2 = arith.constant 2 : index
    %c0_10 = arith.constant 0 : index
    %9 = vector.load %arg2[%c2, %c0_10] : memref<8x128xf32, #tpu.memory_space<vmem>>, vector<1x128xf32>
    %c3 = arith.constant 3 : index
    %c0_11 = arith.constant 0 : index
    %10 = vector.load %arg2[%c3, %c0_11] : memref<8x128xf32, #tpu.memory_space<vmem>>, vector<1x128xf32>
    %c4 = arith.constant 4 : index
    %c0_12 = arith.constant 0 : index
    %11 = vector.load %arg2[%c4, %c0_12] : memref<8x128xf32, #tpu.memory_space<vmem>>, vector<1x128xf32>
    %c5 = arith.constant 5 : index
    %c0_13 = arith.constant 0 : index
    %12 = vector.load %arg2[%c5, %c0_13] : memref<8x128xf32, #tpu.memory_space<vmem>>, vector<1x128xf32>
    %c0_14 = arith.constant 0 : index
    %c0_15 = arith.constant 0 : index
    %13 = vector.load %arg0[%c0_14, %c0_15] : memref<8x16xf32, #tpu.memory_space<vmem>>, vector<8x16xf32>
    %cst = arith.constant dense<0.000000e+00> : vector<8x128xf32>
    %14 = tpu.matmul %13, %0, %cst {dimension_numbers = #tpu.dot_dimension_numbers<[1], [0], [0], [1], [0, 0, 1, 1], [], []>} : vector<8x16xf32>, vector<16x128xf32>, vector<8x128xf32> -> vector<8x128xf32>
    %15 = vector.broadcast %7 : vector<1x128xf32> to vector<8x128xf32>
    %16 = arith.addf %14, %15 : vector<8x128xf32>
    %cst_16 = arith.constant dense<0.000000e+00> : vector<8x128xf32>
    %17 = tpu.matmul %16, %1, %cst_16 {dimension_numbers = #tpu.dot_dimension_numbers<[1], [0], [0], [1], [0, 0, 1, 1], [], []>} : vector<8x128xf32>, vector<128x128xf32>, vector<8x128xf32> -> vector<8x128xf32>
    %18 = vector.broadcast %8 : vector<1x128xf32> to vector<8x128xf32>
    %19 = arith.addf %17, %18 : vector<8x128xf32>
    %cst_17 = arith.constant 0.000000e+00 : f32
    %20 = vector.broadcast %cst_17 : f32 to vector<1x32xf32>
    %21 = vector.extract_strided_slice %19 {offsets = [0, 0], sizes = [1, 128], strides = [1, 1]} : vector<8x128xf32> to vector<1x128xf32>
    %cst_18 = arith.constant dense<0.000000e+00> : vector<1x128xf32>
    %22 = tpu.matmul %20, %2, %cst_18 {dimension_numbers = #tpu.dot_dimension_numbers<[1], [0], [0], [1], [0, 0, 1, 1], [], []>} : vector<1x32xf32>, vector<32x128xf32>, vector<1x128xf32> -> vector<1x128xf32>
    %23 = arith.addf %21, %22 : vector<1x128xf32>
    %24 = math.tanh %23 : vector<1x128xf32>
    %cst_19 = arith.constant 5.000000e-01 : f32
    %25 = vector.broadcast %cst_19 : f32 to vector<1x128xf32>
    %26 = arith.mulf %25, %24 : vector<1x128xf32>
    %cst_20 = arith.constant 5.000000e-01 : f32
    %27 = vector.broadcast %cst_20 : f32 to vector<1x128xf32>
    %28 = arith.addf %26, %27 : vector<1x128xf32>
    %29 = vector.extract_strided_slice %28 {offsets = [0, 0], sizes = [1, 32], strides = [1, 1]} : vector<1x128xf32> to vector<1x32xf32>
    %30 = vector.extract_strided_slice %28 {offsets = [0, 32], sizes = [1, 32], strides = [1, 1]} : vector<1x128xf32> to vector<1x32xf32>
    %31 = vector.extract_strided_slice %24 {offsets = [0, 64], sizes = [1, 32], strides = [1, 1]} : vector<1x128xf32> to vector<1x32xf32>
    %32 = vector.extract_strided_slice %28 {offsets = [0, 96], sizes = [1, 32], strides = [1, 1]} : vector<1x128xf32> to vector<1x32xf32>
    %33 = arith.mulf %30, %20 : vector<1x32xf32>
    %34 = arith.mulf %29, %31 : vector<1x32xf32>
    %35 = arith.addf %33, %34 : vector<1x32xf32>
    %36 = math.tanh %35 : vector<1x32xf32>
    %37 = arith.mulf %32, %36 : vector<1x32xf32>
    %38 = vector.extract_strided_slice %19 {offsets = [1, 0], sizes = [1, 128], strides = [1, 1]} : vector<8x128xf32> to vector<1x128xf32>
    %cst_21 = arith.constant dense<0.000000e+00> : vector<1x128xf32>
    %39 = tpu.matmul %37, %2, %cst_21 {dimension_numbers = #tpu.dot_dimension_numbers<[1], [0], [0], [1], [0, 0, 1, 1], [], []>} : vector<1x32xf32>, vector<32x128xf32>, vector<1x128xf32> -> vector<1x128xf32>
    %40 = arith.addf %38, %39 : vector<1x128xf32>
    %41 = math.tanh %40 : vector<1x128xf32>
    %cst_22 = arith.constant 5.000000e-01 : f32
    %42 = vector.broadcast %cst_22 : f32 to vector<1x128xf32>
    %43 = arith.mulf %42, %41 : vector<1x128xf32>
    %cst_23 = arith.constant 5.000000e-01 : f32
    %44 = vector.broadcast %cst_23 : f32 to vector<1x128xf32>
    %45 = arith.addf %43, %44 : vector<1x128xf32>
    %46 = vector.extract_strided_slice %45 {offsets = [0, 0], sizes = [1, 32], strides = [1, 1]} : vector<1x128xf32> to vector<1x32xf32>
    %47 = vector.extract_strided_slice %45 {offsets = [0, 32], sizes = [1, 32], strides = [1, 1]} : vector<1x128xf32> to vector<1x32xf32>
    %48 = vector.extract_strided_slice %41 {offsets = [0, 64], sizes = [1, 32], strides = [1, 1]} : vector<1x128xf32> to vector<1x32xf32>
    %49 = vector.extract_strided_slice %45 {offsets = [0, 96], sizes = [1, 32], strides = [1, 1]} : vector<1x128xf32> to vector<1x32xf32>
    %50 = arith.mulf %47, %35 : vector<1x32xf32>
    %51 = arith.mulf %46, %48 : vector<1x32xf32>
    %52 = arith.addf %50, %51 : vector<1x32xf32>
    %53 = math.tanh %52 : vector<1x32xf32>
    %54 = arith.mulf %49, %53 : vector<1x32xf32>
    %55 = tpu.concatenate %37, %20 in 1 : vector<1x32xf32>, vector<1x32xf32> -> vector<1x64xf32>
    %cst_24 = arith.constant dense<0.000000e+00> : vector<1x128xf32>
    %56 = tpu.matmul %55, %3, %cst_24 {dimension_numbers = #tpu.dot_dimension_numbers<[1], [0], [0], [1], [0, 0, 1, 1], [], []>} : vector<1x64xf32>, vector<64x128xf32>, vector<1x128xf32> -> vector<1x128xf32>
    %57 = arith.addf %56, %9 : vector<1x128xf32>
    %58 = math.tanh %57 : vector<1x128xf32>
    %cst_25 = arith.constant 5.000000e-01 : f32
    %59 = vector.broadcast %cst_25 : f32 to vector<1x128xf32>
    %60 = arith.mulf %59, %58 : vector<1x128xf32>
    %cst_26 = arith.constant 5.000000e-01 : f32
    %61 = vector.broadcast %cst_26 : f32 to vector<1x128xf32>
    %62 = arith.addf %60, %61 : vector<1x128xf32>
    %63 = vector.extract_strided_slice %62 {offsets = [0, 0], sizes = [1, 32], strides = [1, 1]} : vector<1x128xf32> to vector<1x32xf32>
    %64 = vector.extract_strided_slice %62 {offsets = [0, 32], sizes = [1, 32], strides = [1, 1]} : vector<1x128xf32> to vector<1x32xf32>
    %65 = vector.extract_strided_slice %58 {offsets = [0, 64], sizes = [1, 32], strides = [1, 1]} : vector<1x128xf32> to vector<1x32xf32>
    %66 = vector.extract_strided_slice %62 {offsets = [0, 96], sizes = [1, 32], strides = [1, 1]} : vector<1x128xf32> to vector<1x32xf32>
    %67 = arith.mulf %64, %20 : vector<1x32xf32>
    %68 = arith.mulf %63, %65 : vector<1x32xf32>
    %69 = arith.addf %67, %68 : vector<1x32xf32>
    %70 = math.tanh %69 : vector<1x32xf32>
    %71 = arith.mulf %66, %70 : vector<1x32xf32>
    %72 = vector.extract_strided_slice %19 {offsets = [2, 0], sizes = [1, 128], strides = [1, 1]} : vector<8x128xf32> to vector<1x128xf32>
    %cst_27 = arith.constant dense<0.000000e+00> : vector<1x128xf32>
    %73 = tpu.matmul %54, %2, %cst_27 {dimension_numbers = #tpu.dot_dimension_numbers<[1], [0], [0], [1], [0, 0, 1, 1], [], []>} : vector<1x32xf32>, vector<32x128xf32>, vector<1x128xf32> -> vector<1x128xf32>
    %74 = arith.addf %72, %73 : vector<1x128xf32>
    %75 = math.tanh %74 : vector<1x128xf32>
    %cst_28 = arith.constant 5.000000e-01 : f32
    %76 = vector.broadcast %cst_28 : f32 to vector<1x128xf32>
    %77 = arith.mulf %76, %75 : vector<1x128xf32>
    %cst_29 = arith.constant 5.000000e-01 : f32
    %78 = vector.broadcast %cst_29 : f32 to vector<1x128xf32>
    %79 = arith.addf %77, %78 : vector<1x128xf32>
    %80 = vector.extract_strided_slice %79 {offsets = [0, 0], sizes = [1, 32], strides = [1, 1]} : vector<1x128xf32> to vector<1x32xf32>
    %81 = vector.extract_strided_slice %79 {offsets = [0, 32], sizes = [1, 32], strides = [1, 1]} : vector<1x128xf32> to vector<1x32xf32>
    %82 = vector.extract_strided_slice %75 {offsets = [0, 64], sizes = [1, 32], strides = [1, 1]} : vector<1x128xf32> to vector<1x32xf32>
    %83 = vector.extract_strided_slice %79 {offsets = [0, 96], sizes = [1, 32], strides = [1, 1]} : vector<1x128xf32> to vector<1x32xf32>
    %84 = arith.mulf %81, %52 : vector<1x32xf32>
    %85 = arith.mulf %80, %82 : vector<1x32xf32>
    %86 = arith.addf %84, %85 : vector<1x32xf32>
    %87 = math.tanh %86 : vector<1x32xf32>
    %88 = arith.mulf %83, %87 : vector<1x32xf32>
    %89 = tpu.concatenate %54, %71 in 1 : vector<1x32xf32>, vector<1x32xf32> -> vector<1x64xf32>
    %cst_30 = arith.constant dense<0.000000e+00> : vector<1x128xf32>
    %90 = tpu.matmul %89, %3, %cst_30 {dimension_numbers = #tpu.dot_dimension_numbers<[1], [0], [0], [1], [0, 0, 1, 1], [], []>} : vector<1x64xf32>, vector<64x128xf32>, vector<1x128xf32> -> vector<1x128xf32>
    %91 = arith.addf %90, %9 : vector<1x128xf32>
    %92 = math.tanh %91 : vector<1x128xf32>
    %cst_31 = arith.constant 5.000000e-01 : f32
    %93 = vector.broadcast %cst_31 : f32 to vector<1x128xf32>
    %94 = arith.mulf %93, %92 : vector<1x128xf32>
    %cst_32 = arith.constant 5.000000e-01 : f32
    %95 = vector.broadcast %cst_32 : f32 to vector<1x128xf32>
    %96 = arith.addf %94, %95 : vector<1x128xf32>
    %97 = vector.extract_strided_slice %96 {offsets = [0, 0], sizes = [1, 32], strides = [1, 1]} : vector<1x128xf32> to vector<1x32xf32>
    %98 = vector.extract_strided_slice %96 {offsets = [0, 32], sizes = [1, 32], strides = [1, 1]} : vector<1x128xf32> to vector<1x32xf32>
    %99 = vector.extract_strided_slice %92 {offsets = [0, 64], sizes = [1, 32], strides = [1, 1]} : vector<1x128xf32> to vector<1x32xf32>
    %100 = vector.extract_strided_slice %96 {offsets = [0, 96], sizes = [1, 32], strides = [1, 1]} : vector<1x128xf32> to vector<1x32xf32>
    %101 = arith.mulf %98, %69 : vector<1x32xf32>
    %102 = arith.mulf %97, %99 : vector<1x32xf32>
    %103 = arith.addf %101, %102 : vector<1x32xf32>
    %104 = math.tanh %103 : vector<1x32xf32>
    %105 = arith.mulf %100, %104 : vector<1x32xf32>
    %106 = vector.extract_strided_slice %19 {offsets = [3, 0], sizes = [1, 128], strides = [1, 1]} : vector<8x128xf32> to vector<1x128xf32>
    %cst_33 = arith.constant dense<0.000000e+00> : vector<1x128xf32>
    %107 = tpu.matmul %88, %2, %cst_33 {dimension_numbers = #tpu.dot_dimension_numbers<[1], [0], [0], [1], [0, 0, 1, 1], [], []>} : vector<1x32xf32>, vector<32x128xf32>, vector<1x128xf32> -> vector<1x128xf32>
    %108 = arith.addf %106, %107 : vector<1x128xf32>
    %109 = math.tanh %108 : vector<1x128xf32>
    %cst_34 = arith.constant 5.000000e-01 : f32
    %110 = vector.broadcast %cst_34 : f32 to vector<1x128xf32>
    %111 = arith.mulf %110, %109 : vector<1x128xf32>
    %cst_35 = arith.constant 5.000000e-01 : f32
    %112 = vector.broadcast %cst_35 : f32 to vector<1x128xf32>
    %113 = arith.addf %111, %112 : vector<1x128xf32>
    %114 = vector.extract_strided_slice %113 {offsets = [0, 0], sizes = [1, 32], strides = [1, 1]} : vector<1x128xf32> to vector<1x32xf32>
    %115 = vector.extract_strided_slice %113 {offsets = [0, 32], sizes = [1, 32], strides = [1, 1]} : vector<1x128xf32> to vector<1x32xf32>
    %116 = vector.extract_strided_slice %109 {offsets = [0, 64], sizes = [1, 32], strides = [1, 1]} : vector<1x128xf32> to vector<1x32xf32>
    %117 = vector.extract_strided_slice %113 {offsets = [0, 96], sizes = [1, 32], strides = [1, 1]} : vector<1x128xf32> to vector<1x32xf32>
    %118 = arith.mulf %115, %86 : vector<1x32xf32>
    %119 = arith.mulf %114, %116 : vector<1x32xf32>
    %120 = arith.addf %118, %119 : vector<1x32xf32>
    %121 = math.tanh %120 : vector<1x32xf32>
    %122 = arith.mulf %117, %121 : vector<1x32xf32>
    %123 = tpu.concatenate %88, %105 in 1 : vector<1x32xf32>, vector<1x32xf32> -> vector<1x64xf32>
    %cst_36 = arith.constant dense<0.000000e+00> : vector<1x128xf32>
    %124 = tpu.matmul %123, %3, %cst_36 {dimension_numbers = #tpu.dot_dimension_numbers<[1], [0], [0], [1], [0, 0, 1, 1], [], []>} : vector<1x64xf32>, vector<64x128xf32>, vector<1x128xf32> -> vector<1x128xf32>
    %125 = arith.addf %124, %9 : vector<1x128xf32>
    %126 = math.tanh %125 : vector<1x128xf32>
    %cst_37 = arith.constant 5.000000e-01 : f32
    %127 = vector.broadcast %cst_37 : f32 to vector<1x128xf32>
    %128 = arith.mulf %127, %126 : vector<1x128xf32>
    %cst_38 = arith.constant 5.000000e-01 : f32
    %129 = vector.broadcast %cst_38 : f32 to vector<1x128xf32>
    %130 = arith.addf %128, %129 : vector<1x128xf32>
    %131 = vector.extract_strided_slice %130 {offsets = [0, 0], sizes = [1, 32], strides = [1, 1]} : vector<1x128xf32> to vector<1x32xf32>
    %132 = vector.extract_strided_slice %130 {offsets = [0, 32], sizes = [1, 32], strides = [1, 1]} : vector<1x128xf32> to vector<1x32xf32>
    %133 = vector.extract_strided_slice %126 {offsets = [0, 64], sizes = [1, 32], strides = [1, 1]} : vector<1x128xf32> to vector<1x32xf32>
    %134 = vector.extract_strided_slice %130 {offsets = [0, 96], sizes = [1, 32], strides = [1, 1]} : vector<1x128xf32> to vector<1x32xf32>
    %135 = arith.mulf %132, %103 : vector<1x32xf32>
    %136 = arith.mulf %131, %133 : vector<1x32xf32>
    %137 = arith.addf %135, %136 : vector<1x32xf32>
    %138 = math.tanh %137 : vector<1x32xf32>
    %139 = arith.mulf %134, %138 : vector<1x32xf32>
    %140 = vector.extract_strided_slice %19 {offsets = [4, 0], sizes = [1, 128], strides = [1, 1]} : vector<8x128xf32> to vector<1x128xf32>
    %cst_39 = arith.constant dense<0.000000e+00> : vector<1x128xf32>
    %141 = tpu.matmul %122, %2, %cst_39 {dimension_numbers = #tpu.dot_dimension_numbers<[1], [0], [0], [1], [0, 0, 1, 1], [], []>} : vector<1x32xf32>, vector<32x128xf32>, vector<1x128xf32> -> vector<1x128xf32>
    %142 = arith.addf %140, %141 : vector<1x128xf32>
    %143 = math.tanh %142 : vector<1x128xf32>
    %cst_40 = arith.constant 5.000000e-01 : f32
    %144 = vector.broadcast %cst_40 : f32 to vector<1x128xf32>
    %145 = arith.mulf %144, %143 : vector<1x128xf32>
    %cst_41 = arith.constant 5.000000e-01 : f32
    %146 = vector.broadcast %cst_41 : f32 to vector<1x128xf32>
    %147 = arith.addf %145, %146 : vector<1x128xf32>
    %148 = vector.extract_strided_slice %147 {offsets = [0, 0], sizes = [1, 32], strides = [1, 1]} : vector<1x128xf32> to vector<1x32xf32>
    %149 = vector.extract_strided_slice %147 {offsets = [0, 32], sizes = [1, 32], strides = [1, 1]} : vector<1x128xf32> to vector<1x32xf32>
    %150 = vector.extract_strided_slice %143 {offsets = [0, 64], sizes = [1, 32], strides = [1, 1]} : vector<1x128xf32> to vector<1x32xf32>
    %151 = vector.extract_strided_slice %147 {offsets = [0, 96], sizes = [1, 32], strides = [1, 1]} : vector<1x128xf32> to vector<1x32xf32>
    %152 = arith.mulf %149, %120 : vector<1x32xf32>
    %153 = arith.mulf %148, %150 : vector<1x32xf32>
    %154 = arith.addf %152, %153 : vector<1x32xf32>
    %155 = math.tanh %154 : vector<1x32xf32>
    %156 = arith.mulf %151, %155 : vector<1x32xf32>
    %157 = tpu.concatenate %122, %139 in 1 : vector<1x32xf32>, vector<1x32xf32> -> vector<1x64xf32>
    %cst_42 = arith.constant dense<0.000000e+00> : vector<1x128xf32>
    %158 = tpu.matmul %157, %3, %cst_42 {dimension_numbers = #tpu.dot_dimension_numbers<[1], [0], [0], [1], [0, 0, 1, 1], [], []>} : vector<1x64xf32>, vector<64x128xf32>, vector<1x128xf32> -> vector<1x128xf32>
    %159 = arith.addf %158, %9 : vector<1x128xf32>
    %160 = math.tanh %159 : vector<1x128xf32>
    %cst_43 = arith.constant 5.000000e-01 : f32
    %161 = vector.broadcast %cst_43 : f32 to vector<1x128xf32>
    %162 = arith.mulf %161, %160 : vector<1x128xf32>
    %cst_44 = arith.constant 5.000000e-01 : f32
    %163 = vector.broadcast %cst_44 : f32 to vector<1x128xf32>
    %164 = arith.addf %162, %163 : vector<1x128xf32>
    %165 = vector.extract_strided_slice %164 {offsets = [0, 0], sizes = [1, 32], strides = [1, 1]} : vector<1x128xf32> to vector<1x32xf32>
    %166 = vector.extract_strided_slice %164 {offsets = [0, 32], sizes = [1, 32], strides = [1, 1]} : vector<1x128xf32> to vector<1x32xf32>
    %167 = vector.extract_strided_slice %160 {offsets = [0, 64], sizes = [1, 32], strides = [1, 1]} : vector<1x128xf32> to vector<1x32xf32>
    %168 = vector.extract_strided_slice %164 {offsets = [0, 96], sizes = [1, 32], strides = [1, 1]} : vector<1x128xf32> to vector<1x32xf32>
    %169 = arith.mulf %166, %137 : vector<1x32xf32>
    %170 = arith.mulf %165, %167 : vector<1x32xf32>
    %171 = arith.addf %169, %170 : vector<1x32xf32>
    %172 = math.tanh %171 : vector<1x32xf32>
    %173 = arith.mulf %168, %172 : vector<1x32xf32>
    %174 = vector.extract_strided_slice %19 {offsets = [5, 0], sizes = [1, 128], strides = [1, 1]} : vector<8x128xf32> to vector<1x128xf32>
    %cst_45 = arith.constant dense<0.000000e+00> : vector<1x128xf32>
    %175 = tpu.matmul %156, %2, %cst_45 {dimension_numbers = #tpu.dot_dimension_numbers<[1], [0], [0], [1], [0, 0, 1, 1], [], []>} : vector<1x32xf32>, vector<32x128xf32>, vector<1x128xf32> -> vector<1x128xf32>
    %176 = arith.addf %174, %175 : vector<1x128xf32>
    %177 = math.tanh %176 : vector<1x128xf32>
    %cst_46 = arith.constant 5.000000e-01 : f32
    %178 = vector.broadcast %cst_46 : f32 to vector<1x128xf32>
    %179 = arith.mulf %178, %177 : vector<1x128xf32>
    %cst_47 = arith.constant 5.000000e-01 : f32
    %180 = vector.broadcast %cst_47 : f32 to vector<1x128xf32>
    %181 = arith.addf %179, %180 : vector<1x128xf32>
    %182 = vector.extract_strided_slice %181 {offsets = [0, 0], sizes = [1, 32], strides = [1, 1]} : vector<1x128xf32> to vector<1x32xf32>
    %183 = vector.extract_strided_slice %181 {offsets = [0, 32], sizes = [1, 32], strides = [1, 1]} : vector<1x128xf32> to vector<1x32xf32>
    %184 = vector.extract_strided_slice %177 {offsets = [0, 64], sizes = [1, 32], strides = [1, 1]} : vector<1x128xf32> to vector<1x32xf32>
    %185 = vector.extract_strided_slice %181 {offsets = [0, 96], sizes = [1, 32], strides = [1, 1]} : vector<1x128xf32> to vector<1x32xf32>
    %186 = arith.mulf %183, %154 : vector<1x32xf32>
    %187 = arith.mulf %182, %184 : vector<1x32xf32>
    %188 = arith.addf %186, %187 : vector<1x32xf32>
    %189 = math.tanh %188 : vector<1x32xf32>
    %190 = arith.mulf %185, %189 : vector<1x32xf32>
    %191 = tpu.concatenate %156, %173 in 1 : vector<1x32xf32>, vector<1x32xf32> -> vector<1x64xf32>
    %cst_48 = arith.constant dense<0.000000e+00> : vector<1x128xf32>
    %192 = tpu.matmul %191, %3, %cst_48 {dimension_numbers = #tpu.dot_dimension_numbers<[1], [0], [0], [1], [0, 0, 1, 1], [], []>} : vector<1x64xf32>, vector<64x128xf32>, vector<1x128xf32> -> vector<1x128xf32>
    %193 = arith.addf %192, %9 : vector<1x128xf32>
    %194 = math.tanh %193 : vector<1x128xf32>
    %cst_49 = arith.constant 5.000000e-01 : f32
    %195 = vector.broadcast %cst_49 : f32 to vector<1x128xf32>
    %196 = arith.mulf %195, %194 : vector<1x128xf32>
    %cst_50 = arith.constant 5.000000e-01 : f32
    %197 = vector.broadcast %cst_50 : f32 to vector<1x128xf32>
    %198 = arith.addf %196, %197 : vector<1x128xf32>
    %199 = vector.extract_strided_slice %198 {offsets = [0, 0], sizes = [1, 32], strides = [1, 1]} : vector<1x128xf32> to vector<1x32xf32>
    %200 = vector.extract_strided_slice %198 {offsets = [0, 32], sizes = [1, 32], strides = [1, 1]} : vector<1x128xf32> to vector<1x32xf32>
    %201 = vector.extract_strided_slice %194 {offsets = [0, 64], sizes = [1, 32], strides = [1, 1]} : vector<1x128xf32> to vector<1x32xf32>
    %202 = vector.extract_strided_slice %198 {offsets = [0, 96], sizes = [1, 32], strides = [1, 1]} : vector<1x128xf32> to vector<1x32xf32>
    %203 = arith.mulf %200, %171 : vector<1x32xf32>
    %204 = arith.mulf %199, %201 : vector<1x32xf32>
    %205 = arith.addf %203, %204 : vector<1x32xf32>
    %206 = math.tanh %205 : vector<1x32xf32>
    %207 = arith.mulf %202, %206 : vector<1x32xf32>
    %208 = vector.extract_strided_slice %19 {offsets = [6, 0], sizes = [1, 128], strides = [1, 1]} : vector<8x128xf32> to vector<1x128xf32>
    %cst_51 = arith.constant dense<0.000000e+00> : vector<1x128xf32>
    %209 = tpu.matmul %190, %2, %cst_51 {dimension_numbers = #tpu.dot_dimension_numbers<[1], [0], [0], [1], [0, 0, 1, 1], [], []>} : vector<1x32xf32>, vector<32x128xf32>, vector<1x128xf32> -> vector<1x128xf32>
    %210 = arith.addf %208, %209 : vector<1x128xf32>
    %211 = math.tanh %210 : vector<1x128xf32>
    %cst_52 = arith.constant 5.000000e-01 : f32
    %212 = vector.broadcast %cst_52 : f32 to vector<1x128xf32>
    %213 = arith.mulf %212, %211 : vector<1x128xf32>
    %cst_53 = arith.constant 5.000000e-01 : f32
    %214 = vector.broadcast %cst_53 : f32 to vector<1x128xf32>
    %215 = arith.addf %213, %214 : vector<1x128xf32>
    %216 = vector.extract_strided_slice %215 {offsets = [0, 0], sizes = [1, 32], strides = [1, 1]} : vector<1x128xf32> to vector<1x32xf32>
    %217 = vector.extract_strided_slice %215 {offsets = [0, 32], sizes = [1, 32], strides = [1, 1]} : vector<1x128xf32> to vector<1x32xf32>
    %218 = vector.extract_strided_slice %211 {offsets = [0, 64], sizes = [1, 32], strides = [1, 1]} : vector<1x128xf32> to vector<1x32xf32>
    %219 = vector.extract_strided_slice %215 {offsets = [0, 96], sizes = [1, 32], strides = [1, 1]} : vector<1x128xf32> to vector<1x32xf32>
    %220 = arith.mulf %217, %188 : vector<1x32xf32>
    %221 = arith.mulf %216, %218 : vector<1x32xf32>
    %222 = arith.addf %220, %221 : vector<1x32xf32>
    %223 = math.tanh %222 : vector<1x32xf32>
    %224 = arith.mulf %219, %223 : vector<1x32xf32>
    %225 = tpu.concatenate %190, %207 in 1 : vector<1x32xf32>, vector<1x32xf32> -> vector<1x64xf32>
    %cst_54 = arith.constant dense<0.000000e+00> : vector<1x128xf32>
    %226 = tpu.matmul %225, %3, %cst_54 {dimension_numbers = #tpu.dot_dimension_numbers<[1], [0], [0], [1], [0, 0, 1, 1], [], []>} : vector<1x64xf32>, vector<64x128xf32>, vector<1x128xf32> -> vector<1x128xf32>
    %227 = arith.addf %226, %9 : vector<1x128xf32>
    %228 = math.tanh %227 : vector<1x128xf32>
    %cst_55 = arith.constant 5.000000e-01 : f32
    %229 = vector.broadcast %cst_55 : f32 to vector<1x128xf32>
    %230 = arith.mulf %229, %228 : vector<1x128xf32>
    %cst_56 = arith.constant 5.000000e-01 : f32
    %231 = vector.broadcast %cst_56 : f32 to vector<1x128xf32>
    %232 = arith.addf %230, %231 : vector<1x128xf32>
    %233 = vector.extract_strided_slice %232 {offsets = [0, 0], sizes = [1, 32], strides = [1, 1]} : vector<1x128xf32> to vector<1x32xf32>
    %234 = vector.extract_strided_slice %232 {offsets = [0, 32], sizes = [1, 32], strides = [1, 1]} : vector<1x128xf32> to vector<1x32xf32>
    %235 = vector.extract_strided_slice %228 {offsets = [0, 64], sizes = [1, 32], strides = [1, 1]} : vector<1x128xf32> to vector<1x32xf32>
    %236 = vector.extract_strided_slice %232 {offsets = [0, 96], sizes = [1, 32], strides = [1, 1]} : vector<1x128xf32> to vector<1x32xf32>
    %237 = arith.mulf %234, %205 : vector<1x32xf32>
    %238 = arith.mulf %233, %235 : vector<1x32xf32>
    %239 = arith.addf %237, %238 : vector<1x32xf32>
    %240 = math.tanh %239 : vector<1x32xf32>
    %241 = arith.mulf %236, %240 : vector<1x32xf32>
    %242 = vector.extract_strided_slice %19 {offsets = [7, 0], sizes = [1, 128], strides = [1, 1]} : vector<8x128xf32> to vector<1x128xf32>
    %cst_57 = arith.constant dense<0.000000e+00> : vector<1x128xf32>
    %243 = tpu.matmul %224, %2, %cst_57 {dimension_numbers = #tpu.dot_dimension_numbers<[1], [0], [0], [1], [0, 0, 1, 1], [], []>} : vector<1x32xf32>, vector<32x128xf32>, vector<1x128xf32> -> vector<1x128xf32>
    %244 = arith.addf %242, %243 : vector<1x128xf32>
    %245 = math.tanh %244 : vector<1x128xf32>
    %cst_58 = arith.constant 5.000000e-01 : f32
    %246 = vector.broadcast %cst_58 : f32 to vector<1x128xf32>
    %247 = arith.mulf %246, %245 : vector<1x128xf32>
    %cst_59 = arith.constant 5.000000e-01 : f32
    %248 = vector.broadcast %cst_59 : f32 to vector<1x128xf32>
    %249 = arith.addf %247, %248 : vector<1x128xf32>
    %250 = vector.extract_strided_slice %249 {offsets = [0, 0], sizes = [1, 32], strides = [1, 1]} : vector<1x128xf32> to vector<1x32xf32>
    %251 = vector.extract_strided_slice %249 {offsets = [0, 32], sizes = [1, 32], strides = [1, 1]} : vector<1x128xf32> to vector<1x32xf32>
    %252 = vector.extract_strided_slice %245 {offsets = [0, 64], sizes = [1, 32], strides = [1, 1]} : vector<1x128xf32> to vector<1x32xf32>
    %253 = vector.extract_strided_slice %249 {offsets = [0, 96], sizes = [1, 32], strides = [1, 1]} : vector<1x128xf32> to vector<1x32xf32>
    %254 = arith.mulf %251, %222 : vector<1x32xf32>
    %255 = arith.mulf %250, %252 : vector<1x32xf32>
    %256 = arith.addf %254, %255 : vector<1x32xf32>
    %257 = math.tanh %256 : vector<1x32xf32>
    %258 = arith.mulf %253, %257 : vector<1x32xf32>
    %259 = tpu.concatenate %224, %241 in 1 : vector<1x32xf32>, vector<1x32xf32> -> vector<1x64xf32>
    %cst_60 = arith.constant dense<0.000000e+00> : vector<1x128xf32>
    %260 = tpu.matmul %259, %3, %cst_60 {dimension_numbers = #tpu.dot_dimension_numbers<[1], [0], [0], [1], [0, 0, 1, 1], [], []>} : vector<1x64xf32>, vector<64x128xf32>, vector<1x128xf32> -> vector<1x128xf32>
    %261 = arith.addf %260, %9 : vector<1x128xf32>
    %262 = math.tanh %261 : vector<1x128xf32>
    %cst_61 = arith.constant 5.000000e-01 : f32
    %263 = vector.broadcast %cst_61 : f32 to vector<1x128xf32>
    %264 = arith.mulf %263, %262 : vector<1x128xf32>
    %cst_62 = arith.constant 5.000000e-01 : f32
    %265 = vector.broadcast %cst_62 : f32 to vector<1x128xf32>
    %266 = arith.addf %264, %265 : vector<1x128xf32>
    %267 = vector.extract_strided_slice %266 {offsets = [0, 0], sizes = [1, 32], strides = [1, 1]} : vector<1x128xf32> to vector<1x32xf32>
    %268 = vector.extract_strided_slice %266 {offsets = [0, 32], sizes = [1, 32], strides = [1, 1]} : vector<1x128xf32> to vector<1x32xf32>
    %269 = vector.extract_strided_slice %262 {offsets = [0, 64], sizes = [1, 32], strides = [1, 1]} : vector<1x128xf32> to vector<1x32xf32>
    %270 = vector.extract_strided_slice %266 {offsets = [0, 96], sizes = [1, 32], strides = [1, 1]} : vector<1x128xf32> to vector<1x32xf32>
    %271 = arith.mulf %268, %239 : vector<1x32xf32>
    %272 = arith.mulf %267, %269 : vector<1x32xf32>
    %273 = arith.addf %271, %272 : vector<1x32xf32>
    %274 = math.tanh %273 : vector<1x32xf32>
    %275 = arith.mulf %270, %274 : vector<1x32xf32>
    %276 = tpu.concatenate %258, %275 in 1 : vector<1x32xf32>, vector<1x32xf32> -> vector<1x64xf32>
    %cst_63 = arith.constant dense<0.000000e+00> : vector<1x128xf32>
    %277 = tpu.matmul %276, %3, %cst_63 {dimension_numbers = #tpu.dot_dimension_numbers<[1], [0], [0], [1], [0, 0, 1, 1], [], []>} : vector<1x64xf32>, vector<64x128xf32>, vector<1x128xf32> -> vector<1x128xf32>
    %278 = arith.addf %277, %9 : vector<1x128xf32>
    %279 = math.tanh %278 : vector<1x128xf32>
    %cst_64 = arith.constant 5.000000e-01 : f32
    %280 = vector.broadcast %cst_64 : f32 to vector<1x128xf32>
    %281 = arith.mulf %280, %279 : vector<1x128xf32>
    %cst_65 = arith.constant 5.000000e-01 : f32
    %282 = vector.broadcast %cst_65 : f32 to vector<1x128xf32>
    %283 = arith.addf %281, %282 : vector<1x128xf32>
    %284 = vector.extract_strided_slice %283 {offsets = [0, 0], sizes = [1, 32], strides = [1, 1]} : vector<1x128xf32> to vector<1x32xf32>
    %285 = vector.extract_strided_slice %283 {offsets = [0, 32], sizes = [1, 32], strides = [1, 1]} : vector<1x128xf32> to vector<1x32xf32>
    %286 = vector.extract_strided_slice %279 {offsets = [0, 64], sizes = [1, 32], strides = [1, 1]} : vector<1x128xf32> to vector<1x32xf32>
    %287 = vector.extract_strided_slice %283 {offsets = [0, 96], sizes = [1, 32], strides = [1, 1]} : vector<1x128xf32> to vector<1x32xf32>
    %288 = arith.mulf %285, %273 : vector<1x32xf32>
    %289 = arith.mulf %284, %286 : vector<1x32xf32>
    %290 = arith.addf %288, %289 : vector<1x32xf32>
    %291 = math.tanh %290 : vector<1x32xf32>
    %292 = arith.mulf %287, %291 : vector<1x32xf32>
    %293 = tpu.concatenate %71, %105, %139, %173, %207, %241, %275, %292 in 0 : vector<1x32xf32>, vector<1x32xf32>, vector<1x32xf32>, vector<1x32xf32>, vector<1x32xf32>, vector<1x32xf32>, vector<1x32xf32>, vector<1x32xf32> -> vector<8x32xf32>
    %cst_66 = arith.constant dense<0.000000e+00> : vector<8x128xf32>
    %294 = tpu.matmul %293, %4, %cst_66 {dimension_numbers = #tpu.dot_dimension_numbers<[1], [0], [0], [1], [0, 0, 1, 1], [], []>} : vector<8x32xf32>, vector<32x128xf32>, vector<8x128xf32> -> vector<8x128xf32>
    %295 = vector.broadcast %10 : vector<1x128xf32> to vector<8x128xf32>
    %296 = arith.addf %294, %295 : vector<8x128xf32>
    %297 = math.tanh %296 : vector<8x128xf32>
    %cst_67 = arith.constant dense<0.000000e+00> : vector<8x128xf32>
    %298 = tpu.matmul %297, %5, %cst_67 {dimension_numbers = #tpu.dot_dimension_numbers<[1], [0], [0], [1], [0, 0, 1, 1], [], []>} : vector<8x128xf32>, vector<128x128xf32>, vector<8x128xf32> -> vector<8x128xf32>
    %299 = vector.broadcast %11 : vector<1x128xf32> to vector<8x128xf32>
    %300 = arith.addf %298, %299 : vector<8x128xf32>
    %301 = math.tanh %300 : vector<8x128xf32>
    %cst_68 = arith.constant dense<0.000000e+00> : vector<8x128xf32>
    %302 = tpu.matmul %301, %6, %cst_68 {dimension_numbers = #tpu.dot_dimension_numbers<[1], [0], [0], [1], [0, 0, 1, 1], [], []>} : vector<8x128xf32>, vector<128x128xf32>, vector<8x128xf32> -> vector<8x128xf32>
    %303 = vector.broadcast %12 : vector<1x128xf32> to vector<8x128xf32>
    %304 = arith.addf %302, %303 : vector<8x128xf32>
    %cst_69 = arith.constant dense<0xFF800000> : vector<8xf32>
    %305 = vector.multi_reduction <maximumf>, %304, %cst_69 [1] : vector<8x128xf32> to vector<8xf32>
    %306 = vector.shape_cast %305 : vector<8xf32> to vector<8x1xf32>
    %307 = vector.broadcast %306 : vector<8x1xf32> to vector<8x128xf32>
    %308 = arith.subf %304, %307 : vector<8x128xf32>
    %309 = math.exp %308 : vector<8x128xf32>
    %cst_70 = arith.constant dense<0.000000e+00> : vector<8xf32>
    %310 = vector.multi_reduction <add>, %309, %cst_70 [1] : vector<8x128xf32> to vector<8xf32>
    %311 = vector.shape_cast %310 : vector<8xf32> to vector<8x1xf32>
    %312 = vector.broadcast %311 : vector<8x1xf32> to vector<8x128xf32>
    %313 = arith.divf %309, %312 : vector<8x128xf32>
    %c0_71 = arith.constant 0 : index
    %c0_72 = arith.constant 0 : index
    %314 = vector.load %arg3[%c0_71, %c0_72] : memref<8x128xf32, #tpu.memory_space<vmem>>, vector<8x128xf32>
    tpu.vector_store %arg3[%c0_71, %c0_72], %313 {strides = array<i32>} : memref<8x128xf32, #tpu.memory_space<vmem>>, vector<8x128xf32>,
    return
  }
}

</mosaic_0001>

<bundles_post_ra>
// kernel: actor_lstm_forward.1
= control target key start
LH: loop header
LB: loop body
LE: loop exit
PB: predicated region body
PF: predicated region fallthrough
CT: control target
= control target key end

     0   :  { %8 = vsyncpa [#allocation3], 0  ;;  %s3044_s12 = smov [#allocation2]   ;;  %s3464_s0 = inlined_call_operand.vmem [shape: f32[8,16], index: 0, kind: input, shape index: {}]   ;;  %s3465_s1 = inlined_call_operand.hbm [shape: f32[528,128], index: 1, kind: input, shape index: {}]   ;;  %s3466_s2 = inlined_call_operand.vmem [shape: f32[8,128], index: 2, kind: input, shape index: {}]   ;;  %s3467_s3 = inlined_call_operand.vmem [shape: f32[8,128], index: 3, kind: output, shape index: {}]  }
   0x1   :  { %s16_s13 = sshll.u32 %s3044_s12, 4  ;;  %s3020_s16 = scalar_lea.hbm %s3465_s1, 8448  ;;  %s17_s13 = int_to_ptr.vmem [resolvable:$true] %s16_s13 }
   0x2   :  { %p3021_p0 = scmp.ne.s32.totalorder %s3465_s1, %s3020_s16  ;;  %p3024_p1 = scmp.lt.u32.totalorder %s3020_s16, %s3465_s1 }
   0x4   :  { %p3026_p2 = pnand %p3024_p1, %p3021_p0 }
   0x6   :  { %3029 = shalt.err (!%p3026_p2)
}
   0x7   :  { %s3030_s21 = scalar_lea.vmem %s17_s13, 8448  ;;  %p3035_p4 = scmp.lt.s32.totalorder %s17_s13, %s17_s13 }
   0x8   :  { %p3031_p3 = scmp.ne.s32.totalorder %s17_s13, %s3030_s21  ;;  %p3036_p5 = scmp.lt.s32.totalorder %s3030_s21, %s3030_s21 }
   0xa   :  { %p3037_p6 = por %p3036_p5, %p3035_p4 }
   0xc   :  { %p3038_p7 = pnand %p3037_p6, %p3031_p3 }
   0xe   :  { %3041 = shalt.err (!%p3038_p7)
}
   0xf   :  { %s3045_s22 = smov 128   ;;  %s3046_s23 = smov 8  }
  0x10   :  { %22 = dma.hbm_to_vmem [thread:$0]  %s3465_s1, 8448, %s17_s13, [#allocation3], %s3045_s22, %s3045_s22, %s3046_s23  }
  0x11   :  { %3042 = dma.done.wait [#allocation3], 8448  }
  0x12   :  { %3043 = vsyncadd [#allocation3], 4294958848  ;;  %v3047_v0 = vmov 0.0|0.0   ;;  %vm3048_vm0 = vmmov 0   ;;  %v3049_v1 = vmov 0.0   ;;  %v28_v2 = vld [vmem:[#allocation2] sm:$0xff] }
  0x13   :  { %2715 = vmatprep.subr.bf16.mxu0 %v3047_v0  ;;  %2356 = vmatprep.mubr.msk.f32.mxu0 %vm3048_vm0, %v3049_v1  ;;  %v29_v3 = vld [vmem:[#allocation2 + $0x8] sm:$0xff]  ;;  %v30_v5 = vld [vmem:[#allocation2 + $0x10] sm:$0xff]  ;;  %v31_v6 = vld [vmem:[#allocation2 + $0x18] sm:$0xff]  ;;  %vm105_vm1 = vcmask 130048   ;;  %s3050_s30 = smov 64   ;;  %s3051_s4 = smov 32  }
  0x14   :  { %2718 = vmatprep.subr.bf16.mxu1 %v3047_v0  ;;  %2391 = vmatprep.mubr.msk.f32.mxu1 %vm3048_vm0, %v3049_v1  ;;  %v2716_v4 = vpack.c.bf16 %v29_v3, %v28_v2  ;;  %v32_v7 = vld [vmem:[#allocation2 + $0x20] sm:$0xff]  ;;  %v2719_v8 = vpack.c.bf16 %v31_v6, %v30_v5  ;;  %v33_v9 = vld [vmem:[#allocation2 + $0x28] sm:$0xff]  ;;  %v34_v12 = vld [vmem:[#allocation2 + $0x30] sm:$0xff]  ;;  %vm253_vm2 = vcmask 261120   ;;  %vm452_vm3 = vcmask 523264  }
  0x15   :  { %v100_v10 = vld [vmem:[%s3464_s0] sm:$0xff]  ;;  %v2722_v11 = vpack.c.bf16 %v33_v9, %v32_v7  ;;  %v35_v13 = vld [vmem:[#allocation2 + $0x38] sm:$0xff]  ;;  %v46_v14 = vld [vmem:[#allocation2 + $0x90] sm:$0xff]  ;;  %vm1901_vm4 = vcmask 1040384   ;;  %vm1903_vm5 = vcmask 1041408   ;;  %vm1905_vm6 = vcmask 1042432  }
  0x16   :  { %2717 = vmatpush3.bf16.msra.mxu0 %v2716_v4  ;;  %2720 = vmatpush3.bf16.msra.mxu1 %v2719_v8  ;;  %v47_v15 = vld [vmem:[#allocation2 + $0x98] sm:$0xff]  ;;  %v2725_v17 = vpack.c.bf16 %v35_v13, %v34_v12  ;;  %v36_v18 = vld [vmem:[#allocation2 + $0x40] sm:$0xff]  ;;  %v37_v19 = vld [vmem:[#allocation2 + $0x48] sm:$0xff]  ;;  %vm1907_vm7 = vcmask 1043456   ;;  %vm1909_vm8 = vcmask 1044480   ;;  %vm1911_vm9 = vcmask 1045504  }
  0x17   :  { %2742 = vmatprep.subr.bf16.mxu0 %v3047_v0  ;;  %2721 = vmatprep.subr.bf16.mxu1 %v3047_v0  ;;  %v3095_v16 = vpack.c.bf16 %v47_v15, %v46_v14  ;;  %v2728_v20 = vpack.c.bf16 %v37_v19, %v36_v18  ;;  %v38_v21 = vld [vmem:[#allocation2 + $0x50] sm:$0xff]  ;;  %v39_v22 = vld [vmem:[#allocation2 + $0x58] sm:$0xff]  ;;  %v40_v24 = vld [vmem:[#allocation2 + $0x60] sm:$0xff]  ;;  %vm1913_vm10 = vcmask 1046528  }
  0x18   :  { %v2731_v23 = vpack.c.bf16 %v39_v22, %v38_v21  ;;  %v41_v25 = vld [vmem:[#allocation2 + $0x68] sm:$0xff]  ;;  %v42_v27 = vld [vmem:[#allocation2 + $0x70] sm:$0xff]  ;;  %v43_v28 = vld [vmem:[#allocation2 + $0x78] sm:$0xff] }
  0x19   :  { %2357 = vmatmul.mubr.msk.f32.vlgmr.msra.gmra.mrb[0].mxu0 %vm105_vm1, %v100_v10  ;;  %v2734_v26 = vpack.c.bf16 %v41_v25, %v40_v24  ;;  %v2737_v29 = vpack.c.bf16 %v43_v28, %v42_v27  ;;  %v44_v30 = vld [vmem:[#allocation2 + $0x80] sm:$0xff]  ;;  %v45_v31 = vld [vmem:[#allocation2 + $0x88] sm:$0xff]  ;;  %v50_v58 = vld [vmem:[#allocation2 + $0xb0] sm:$0xff] }
  0x1a   :  { %2402 = vmatprep.mubr.msk.f32.mxu0 %vm3048_vm0, %v3049_v1  ;;  %2723 = vmatpush3.bf16.msra.mxu1 %v2722_v11  ;;  %v2740_v32 = vpack.c.bf16 %v45_v31, %v44_v30  ;;  %v48_v33 = vld [vmem:[#allocation2 + $0xa0] sm:$0xff]  ;;  %v49_v34 = vld [vmem:[#allocation2 + $0xa8] sm:$0xff]  ;;  %v51_v59 = vld [vmem:[#allocation2 + $0xb8] sm:$0xff] }
  0x1b   :  { %2724 = vmatprep.subr.bf16.mxu1 %v3047_v0  ;;  %2744 = vmatpush3.bf16.msra.mxu0 %v3095_v16  ;;  %v3107_v35 = vpack.c.bf16 %v49_v34, %v48_v33  ;;  %v2159_v36 = vld [vmem:[%s3466_s2] ss:$0 sm:$0xff]  ;;  %v2161_v42 = vld [vmem:[%s3466_s2 + $0x1] ss:$0 sm:$0xff]  ;;  %v3141_v60 = vpack.c.bf16 %v51_v59, %v50_v58  ;;  %v53_v62 = vld [vmem:[#allocation2 + $0xc8] sm:$0xff] }
  0x1c   :  { %2745 = vmatprep.subr.bf16.mxu0 %v3047_v0  ;;  %v52_v61 = vld [vmem:[#allocation2 + $0xc0] sm:$0xff]  ;;  %v54_v3 = vld [vmem:[#allocation2 + $0xd0] sm:$0xff]  ;;  %v55_v4 = vld [vmem:[#allocation2 + $0xd8] sm:$0xff] }
  0x1d   :  { %v3145_v2 = vpack.c.bf16 %v53_v62, %v52_v61  ;;  %v3151_v5 = vpack.c.bf16 %v55_v4, %v54_v3  ;;  %v56_v6 = vld [vmem:[#allocation2 + $0xe0] sm:$0xff]  ;;  %v57_v7 = vld [vmem:[#allocation2 + $0xe8] sm:$0xff] }
  0x1e   :  { %2726 = vmatpush3.bf16.msra.mxu1 %v2725_v17  ;;  %v3155_v8 = vpack.c.bf16 %v57_v7, %v56_v6  ;;  %v3176_v14 = vld [vmem:[%s3466_s2 + $0x2] sm:$0x1] }
  0x1f   :  { %2727 = vmatprep.subr.bf16.mxu1 %v3047_v0  ;;  %2747 = vmatpush3.bf16.msra.mxu0 %v3107_v35 }
  0x20   :  { %2748 = vmatprep.subr.bf16.mxu0 %v3047_v0 }
  0x22   :  { %2729 = vmatpush3.bf16.msra.mxu1 %v2728_v20  ;;  %2403 = vmatmul.mubr.f32.vlgmr.msra.gmra.mrb[2].mxu0 %v3049_v1 }
  0x23   :  { %2730 = vmatprep.subr.bf16.mxu1 %v3047_v0  ;;  %2750 = vmatpush3.bf16.msra.mxu0 %v3095_v16 }
  0x24   :  { %2413 = vmatprep.mubr.msk.f32.mxu0 %vm3048_vm0, %v3049_v1  ;;  %2751 = vmatprep.subr.bf16.mxu0 %v3047_v0 }
  0x26   :  { %2732 = vmatpush3.bf16.msra.mxu1 %v2731_v23 }
  0x27   :  { %2733 = vmatprep.subr.bf16.mxu1 %v3047_v0  ;;  %2753 = vmatpush3.bf16.msra.mxu0 %v3107_v35 }
  0x28   :  { %2754 = vmatprep.subr.bf16.mxu0 %v3047_v0 }
  0x2a   :  { %2735 = vmatpush3.bf16.msra.mxu1 %v2734_v26 }
  0x2b   :  { %2736 = vmatprep.subr.bf16.mxu1 %v3047_v0 }
  0x2e   :  { %2738 = vmatpush3.bf16.msra.mxu1 %v2737_v29 }
  0x2f   :  { %2739 = vmatprep.subr.bf16.mxu1 %v3047_v0 }
  0x32   :  { %2741 = vmatpush3.bf16.msra.mxu1 %v2740_v32 }
  0x33   :  { %2766 = vmatprep.subr.bf16.mxu1 %v3047_v0 }
  0xec   :  { %v175_v37 = vpop.f32.mrb[0].mxu0 }
  0xed   :  { %v176_v38 = vadd.f32 %v2159_v36, %v175_v37  ;;  %v2358_v39 = vpop.f32.mrb[1].mxu0 }
  0xef   :  { %2392 = vmatmul.mubr.f32.vlgmr.msra.gmra.mrb[0].mxu1 %v176_v38 }
  0xf0   :  { %2768 = vmatpush3.bf16.msra.mxu1 %v3095_v16  ;;  %2443 = vmatprep.mubr.msk.f32.mxu1 %vm3048_vm0, %v3049_v1 }
  0xf1   :  { %2769 = vmatprep.subr.bf16.mxu1 %v3047_v0 }
  0xf4   :  { %2771 = vmatpush3.bf16.msra.mxu1 %v3107_v35 }
  0xf5   :  { %2784 = vmatprep.subr.bf16.mxu1 %v3047_v0  ;;  %v323_v40 = vpop.f32.mrb[2].mxu0 }
  0xf6   :  { %v2404_v41 = vpop.f32.mrb[3].mxu0 }
 0x1c2   :  { %v249_v43 = vpop.f32.mrb[0].mxu1 }
 0x1c3   :  { %v3131_v44 = vadd.f32 %v2161_v42, %v249_v43  ;;  %v2393_v45 = vpop.f32.mrb[1].mxu1 }
 0x1c5   :  { %v327_v46 = vadd.f32 %v323_v40, %v3131_v44 }
 0x1c7   :  { %2948 = vtanh.f32 %v327_v46 }
 0x1d1   :  { %v2949_v47 = vpop.eup %2948 }
 0x1d2   :  { %333 = vrot.lane.b32.xlu0 %v2949_v47, %s3050_s30  ;;  %v329_v48 = vmul.f32 0.5, %v2949_v47 }
 0x1d4   :  { %v330_v49 = vadd.f32 0.5, %v329_v48 }
 0x1d6   :  { %v331_v52 = vmul.f32 0.0, %v330_v49 }
 0x244   :  { %v334_v50 = vpop.permute.xlu0 %333 }
 0x245   :  { %v336_v51 = vmul.f32 %v334_v50, %v330_v49 }
 0x247   :  { %338 = vrot.lane.b32.xlu0 %v336_v51, %s3051_s4 }
 0x2b9   :  { %v339_v53 = vpop.permute.xlu0 %338 }
 0x2ba   :  { %v3136_v54 = vadd.f32 %v339_v53, %v331_v52 }
 0x2bc   :  { %2950 = vtanh.f32 %v3136_v54  ;;  %v431_v29 = vrot.slane %v3136_v54, 7 }
 0x2c6   :  { %v2951_v55 = vpop.eup %2950 }
 0x2c7   :  { %344 = vrot.lane.b32.xlu1 %v2951_v55, %s3050_s30 }
 0x339   :  { %v345_v56 = vpop.permute.xlu1 %344 }
 0x33a   :  { %v347_v57 = vmul.f32 %v345_v56, %v330_v49 }
 0x33c   :  { %349 = vrot.lane.b32.xlu1 %v347_v57, %s3051_s4 }
 0x3ae   :  { %v350_v63 = vpop.permute.xlu1 %349 }
 0x3af   :  { %2414 = vmatmul.mubr.msk.f32.vlgmr.msra.gmra.mrb[4].mxu0 %vm253_vm2, %v350_v63  ;;  %v451_v9 = vsel %vm253_vm2, %v350_v63, 0.0 }
 0x3b0   :  { %2756 = vmatpush3.bf16.msra.mxu0 %v3141_v60  ;;  %2432 = vmatprep.mubr.msk.f32.mxu0 %vm3048_vm0, %v3049_v1 }
 0x3b1   :  { %2757 = vmatprep.subr.bf16.mxu0 %v3047_v0 }
 0x3b4   :  { %2759 = vmatpush3.bf16.msra.mxu0 %v3145_v2 }
 0x3b5   :  { %2760 = vmatprep.subr.bf16.mxu0 %v3047_v0 }
 0x3b8   :  { %2762 = vmatpush3.bf16.msra.mxu0 %v3151_v5 }
 0x3b9   :  { %2763 = vmatprep.subr.bf16.mxu0 %v3047_v0 }
 0x3bc   :  { %2765 = vmatpush3.bf16.msra.mxu0 %v3155_v8 }
 0x3bd   :  { %2772 = vmatprep.subr.bf16.mxu0 %v3047_v0 }
 0x3bf   :  { %2433 = vmatmul.mubr.msk.f32.vlgmr.msra.gmra.mrb[6].mxu0 %vm452_vm3, %v451_v9 }
 0x3c0   :  { %2774 = vmatpush3.bf16.msra.mxu0 %v3141_v60  ;;  %2462 = vmatprep.mubr.msk.f32.mxu0 %vm3048_vm0, %v3049_v1 }
 0x3c1   :  { %2775 = vmatprep.subr.bf16.mxu0 %v3047_v0 }
 0x3c4   :  { %2777 = vmatpush3.bf16.msra.mxu0 %v3145_v2 }
 0x3c5   :  { %2778 = vmatprep.subr.bf16.mxu0 %v3047_v0 }
 0x3c8   :  { %2780 = vmatpush3.bf16.msra.mxu0 %v3151_v5 }
 0x3c9   :  { %2781 = vmatprep.subr.bf16.mxu0 %v3047_v0 }
 0x3cc   :  { %2783 = vmatpush3.bf16.msra.mxu0 %v3155_v8 }
 0x3cd   :  { %2802 = vmatprep.subr.bf16.mxu0 %v3047_v0 }
 0x482   :  { %v419_v10 = vpop.f32.mrb[4].mxu0 }
 0x483   :  { %v424_v11 = vrot.slane %v419_v10, 7  ;;  %v2415_v12 = vpop.f32.mrb[5].mxu0 }
 0x485   :  { %v426_v13 = vadd.f32 %v424_v11, %v3131_v44 }
 0x487   :  { %2952 = vtanh.f32 %v426_v13 }
 0x491   :  { %v2953_v15 = vpop.eup %2952 }
 0x492   :  { %v522_v17 = vpop.f32.mrb[6].mxu0  ;;  %435 = vrot.lane.b32.xlu0 %v2953_v15, %s3050_s30  ;;  %v428_v21 = vmul.f32 0.5, %v2953_v15 }
 0x493   :  { %v523_v18 = vadd.f32 %v522_v17, %v3176_v14  ;;  %v2434_v19 = vpop.f32.mrb[7].mxu0 }
 0x494   :  { %v429_v22 = vadd.f32 0.5, %v428_v21 }
 0x495   :  { %2954 = vtanh.f32 %v523_v18 }
 0x496   :  { %v433_v30 = vmul.f32 %v431_v29, %v429_v22 }
 0x49f   :  { %v2955_v20 = vpop.eup %2954 }
 0x4a0   :  { %531 = vrot.lane.b32.xlu1 %v2955_v20, %s3050_s30  ;;  %v527_v25 = vmul.f32 0.5, %v2955_v20 }
 0x4a2   :  { %v528_v26 = vadd.f32 0.5, %v527_v25 }
 0x4a4   :  { %v529_v34 = vmul.f32 0.0, %v528_v26 }
 0x504   :  { %v436_v23 = vpop.permute.xlu0 %435 }
 0x505   :  { %v438_v24 = vmul.f32 %v436_v23, %v429_v22 }
 0x507   :  { %440 = vrot.lane.b32.xlu0 %v438_v24, %s3051_s4 }
 0x512   :  { %v532_v27 = vpop.permute.xlu1 %531 }
 0x513   :  { %v534_v28 = vmul.f32 %v532_v27, %v528_v26 }
 0x515   :  { %536 = vrot.lane.b32.xlu1 %v534_v28, %s3051_s4 }
 0x579   :  { %v441_v31 = vpop.permute.xlu0 %440 }
 0x57a   :  { %v443_v32 = vadd.f32 %v441_v31, %v433_v30 }
 0x57c   :  { %2956 = vtanh.f32 %v443_v32  ;;  %v630_v10 = vrot.slane %v443_v32, 7 }
 0x586   :  { %v2957_v33 = vpop.eup %2956 }
 0x587   :  { %v537_v36 = vpop.permute.xlu1 %536  ;;  %446 = vrot.lane.b32.xlu0 %v2957_v33, %s3050_s30 }
 0x588   :  { %v539_v37 = vadd.f32 %v537_v36, %v529_v34 }
 0x58a   :  { %2958 = vtanh.f32 %v539_v37 }
 0x594   :  { %v2959_v38 = vpop.eup %2958 }
 0x595   :  { %542 = vrot.lane.b32.xlu1 %v2959_v38, %s3050_s30 }
 0x5f9   :  { %v447_v39 = vpop.permute.xlu0 %446 }
 0x5fa   :  { %v449_v40 = vmul.f32 %v447_v39, %v429_v22 }
 0x5fc   :  { %v547_v41 = vrot.slane %v449_v40, 1  ;;  %649 = vrot.lane.b32.xlu1 %v449_v40, %s3051_s4 }
 0x5fe   :  { %548 = vrot.lane.b32.xlu0 %v547_v41, %s3051_s4 }
 0x607   :  { %v543_v42 = vpop.permute.xlu1 %542 }
 0x608   :  { %v3188_v43 = vmul.f32 %v543_v42, %v528_v26 }
 0x60a   :  { %v653_v45 = vrot.slane %v3188_v43, 7 }
 0x60c   :  { %654 = vrot.lane.b32.xlu0 %v653_v45, %s3050_s30 }
 0x66e   :  { %v650_v47 = vpop.permute.xlu1 %649 }
 0x670   :  { %v549_v46 = vpop.permute.xlu0 %548 }
 0x671   :  { %2444 = vmatmul.mubr.msk.f32.vlgmr.msra.gmra.mrb[2].mxu1 %vm253_vm2, %v549_v46 }
 0x672   :  { %2786 = vmatpush3.bf16.msra.mxu1 %v3095_v16  ;;  %2473 = vmatprep.mubr.msk.f32.mxu1 %vm3048_vm0, %v3049_v1 }
 0x673   :  { %2787 = vmatprep.subr.bf16.mxu1 %v3047_v0 }
 0x676   :  { %2789 = vmatpush3.bf16.msra.mxu1 %v3107_v35 }
 0x677   :  { %2790 = vmatprep.subr.bf16.mxu1 %v3047_v0 }
 0x67e   :  { %v655_v48 = vpop.permute.xlu0 %654 }
 0x67f   :  { %v657_v49 = vsel %vm253_vm2, %v650_v47, %v655_v48 }
 0x680   :  { %v659_v50 = vrot.slane %v657_v49, 1 }
 0x682   :  { %2463 = vmatmul.mubr.msk.f32.vlgmr.msra.gmra.mrb[8].mxu0 %vm452_vm3, %v659_v50 }
 0x683   :  { %2804 = vmatpush3.bf16.msra.mxu0 %v3095_v16  ;;  %2503 = vmatprep.mubr.msk.f32.mxu0 %vm3048_vm0, %v3049_v1 }
 0x684   :  { %2805 = vmatprep.subr.bf16.mxu0 %v3047_v0 }
 0x687   :  { %2807 = vmatpush3.bf16.msra.mxu0 %v3107_v35 }
 0x688   :  { %2808 = vmatprep.subr.bf16.mxu0 %v3047_v0 }
 0x744   :  { %v618_v51 = vpop.f32.mrb[2].mxu1 }
 0x745   :  { %v623_v52 = vrot.slane %v618_v51, 6  ;;  %v2445_v53 = vpop.f32.mrb[3].mxu1 }
 0x747   :  { %v625_v54 = vadd.f32 %v623_v52, %v3131_v44 }
 0x749   :  { %2960 = vtanh.f32 %v625_v54 }
 0x753   :  { %v2961_v55 = vpop.eup %2960 }
 0x754   :  { %634 = vrot.lane.b32.xlu1 %v2961_v55, %s3050_s30  ;;  %v627_v61 = vmul.f32 0.5, %v2961_v55 }
 0x755   :  { %v728_v56 = vpop.f32.mrb[8].mxu0 }
 0x756   :  { %v729_v57 = vadd.f32 %v728_v56, %v3176_v14  ;;  %v2464_v58 = vpop.f32.mrb[9].mxu0  ;;  %v628_v62 = vadd.f32 0.5, %v627_v61 }
 0x758   :  { %2962 = vtanh.f32 %v729_v57  ;;  %v632_v11 = vmul.f32 %v630_v10, %v628_v62 }
 0x762   :  { %v2963_v59 = vpop.eup %2962 }
 0x763   :  { %737 = vrot.lane.b32.xlu0 %v2963_v59, %s3050_s30  ;;  %v733_v4 = vmul.f32 0.5, %v2963_v59 }
 0x765   :  { %v734_v6 = vadd.f32 0.5, %v733_v4 }
 0x767   :  { %v735_v17 = vmul.f32 %v734_v6, %v539_v37 }
 0x7c6   :  { %v635_v63 = vpop.permute.xlu1 %634 }
 0x7c7   :  { %v637_v3 = vmul.f32 %v635_v63, %v628_v62 }
 0x7c9   :  { %639 = vrot.lane.b32.xlu1 %v637_v3, %s3051_s4 }
 0x7d5   :  { %v738_v7 = vpop.permute.xlu0 %737 }
 0x7d6   :  { %v740_v9 = vmul.f32 %v738_v7, %v734_v6 }
 0x7d8   :  { %742 = vrot.lane.b32.xlu0 %v740_v9, %s3051_s4 }
 0x83b   :  { %v640_v12 = vpop.permute.xlu1 %639 }
 0x83c   :  { %v3213_v13 = vadd.f32 %v640_v12, %v632_v11 }
 0x83e   :  { %2964 = vtanh.f32 %v3213_v13  ;;  %v836_v52 = vrot.slane %v3213_v13, 7 }
 0x848   :  { %v2965_v15 = vpop.eup %2964 }
 0x849   :  { %645 = vrot.lane.b32.xlu1 %v2965_v15, %s3050_s30 }
 0x84a   :  { %v743_v18 = vpop.permute.xlu0 %742 }
 0x84b   :  { %v3217_v19 = vadd.f32 %v743_v18, %v735_v17 }
 0x84d   :  { %2966 = vtanh.f32 %v3217_v19 }
 0x857   :  { %v2967_v20 = vpop.eup %2966 }
 0x858   :  { %748 = vrot.lane.b32.xlu0 %v2967_v20, %s3050_s30 }
 0x8bb   :  { %v646_v21 = vpop.permute.xlu1 %645 }
 0x8bc   :  { %v648_v22 = vmul.f32 %v646_v21, %v628_v62 }
 0x8be   :  { %v753_v23 = vrot.slane %v648_v22, 2  ;;  %855 = vrot.lane.b32.xlu0 %v648_v22, %s3051_s4 }
 0x8c0   :  { %754 = vrot.lane.b32.xlu1 %v753_v23, %s3051_s4 }
 0x8ca   :  { %v749_v24 = vpop.permute.xlu0 %748 }
 0x8cb   :  { %v3223_v25 = vmul.f32 %v749_v24, %v734_v6 }
 0x8cd   :  { %v859_v26 = vrot.slane %v3223_v25, 6  ;;  %v1886_v4 = vrot.slane %v3223_v25, 7 }
 0x8cf   :  { %860 = vrot.lane.b32.xlu1 %v859_v26, %s3050_s30  ;;  %v1902_v11 = vsel %vm1901_vm4, %v3188_v43, %v1886_v4 }
 0x930   :  { %v856_v28 = vpop.permute.xlu0 %855 }
 0x932   :  { %v755_v27 = vpop.permute.xlu1 %754 }
 0x933   :  { %2474 = vmatmul.mubr.msk.f32.vlgmr.msra.gmra.mrb[4].mxu1 %vm253_vm2, %v755_v27 }
 0x934   :  { %2792 = vmatpush3.bf16.msra.mxu1 %v3141_v60  ;;  %2492 = vmatprep.mubr.msk.f32.mxu1 %vm3048_vm0, %v3049_v1 }
 0x935   :  { %2793 = vmatprep.subr.bf16.mxu1 %v3047_v0 }
 0x938   :  { %2795 = vmatpush3.bf16.msra.mxu1 %v3145_v2 }
 0x939   :  { %2796 = vmatprep.subr.bf16.mxu1 %v3047_v0 }
 0x93c   :  { %2798 = vmatpush3.bf16.msra.mxu1 %v3151_v5 }
 0x93d   :  { %2799 = vmatprep.subr.bf16.mxu1 %v3047_v0 }
 0x940   :  { %2801 = vmatpush3.bf16.msra.mxu1 %v3155_v8 }
 0x941   :  { %v861_v29 = vpop.permute.xlu1 %860  ;;  %2820 = vmatprep.subr.bf16.mxu1 %v3047_v0 }
 0x942   :  { %v863_v30 = vsel %vm253_vm2, %v856_v28, %v861_v29 }
 0x943   :  { %v865_v31 = vrot.slane %v863_v30, 2 }
 0x945   :  { %2493 = vmatmul.mubr.msk.f32.vlgmr.msra.gmra.mrb[6].mxu1 %vm452_vm3, %v865_v31 }
 0x946   :  { %2822 = vmatpush3.bf16.msra.mxu1 %v3095_v16  ;;  %2533 = vmatprep.mubr.msk.f32.mxu1 %vm3048_vm0, %v3049_v1 }
 0x947   :  { %2823 = vmatprep.subr.bf16.mxu1 %v3047_v0 }
 0x94a   :  { %2825 = vmatpush3.bf16.msra.mxu1 %v3107_v35 }
 0x94b   :  { %2826 = vmatprep.subr.bf16.mxu1 %v3047_v0 }
 0xa06   :  { %v824_v32 = vpop.f32.mrb[4].mxu1 }
 0xa07   :  { %v829_v33 = vrot.slane %v824_v32, 5  ;;  %v2475_v34 = vpop.f32.mrb[5].mxu1 }
 0xa09   :  { %v831_v36 = vadd.f32 %v829_v33, %v3131_v44 }
 0xa0b   :  { %2968 = vtanh.f32 %v831_v36 }
 0xa15   :  { %v2969_v37 = vpop.eup %2968 }
 0xa16   :  { %840 = vrot.lane.b32.xlu0 %v2969_v37, %s3050_s30  ;;  %v833_v42 = vmul.f32 0.5, %v2969_v37 }
 0xa18   :  { %v934_v38 = vpop.f32.mrb[6].mxu1  ;;  %v834_v45 = vadd.f32 0.5, %v833_v42 }
 0xa19   :  { %v935_v39 = vadd.f32 %v934_v38, %v3176_v14  ;;  %v2494_v40 = vpop.f32.mrb[7].mxu1 }
 0xa1a   :  { %v838_v53 = vmul.f32 %v836_v52, %v834_v45 }
 0xa1b   :  { %2970 = vtanh.f32 %v935_v39 }
 0xa25   :  { %v2971_v41 = vpop.eup %2970 }
 0xa26   :  { %943 = vrot.lane.b32.xlu1 %v2971_v41, %s3050_s30  ;;  %v939_v48 = vmul.f32 0.5, %v2971_v41 }
 0xa28   :  { %v940_v49 = vadd.f32 0.5, %v939_v48 }
 0xa2a   :  { %v941_v57 = vmul.f32 %v940_v49, %v3217_v19 }
 0xa88   :  { %v841_v46 = vpop.permute.xlu0 %840 }
 0xa89   :  { %v843_v47 = vmul.f32 %v841_v46, %v834_v45 }
 0xa8b   :  { %845 = vrot.lane.b32.xlu0 %v843_v47, %s3051_s4 }
 0xa98   :  { %v944_v50 = vpop.permute.xlu1 %943 }
 0xa99   :  { %v946_v51 = vmul.f32 %v944_v50, %v940_v49 }
 0xa9b   :  { %948 = vrot.lane.b32.xlu1 %v946_v51, %s3051_s4 }
 0xafd   :  { %v846_v54 = vpop.permute.xlu0 %845 }
 0xafe   :  { %v3253_v55 = vadd.f32 %v846_v54, %v838_v53 }
 0xb00   :  { %2972 = vtanh.f32 %v3253_v55  ;;  %v1042_v37 = vrot.slane %v3253_v55, 7 }
 0xb0a   :  { %v2973_v56 = vpop.eup %2972 }
 0xb0b   :  { %851 = vrot.lane.b32.xlu0 %v2973_v56, %s3050_s30 }
 0xb0d   :  { %v949_v58 = vpop.permute.xlu1 %948 }
 0xb0e   :  { %v3258_v59 = vadd.f32 %v949_v58, %v941_v57 }
 0xb10   :  { %2974 = vtanh.f32 %v3258_v59 }
 0xb1a   :  { %v2975_v61 = vpop.eup %2974 }
 0xb1b   :  { %954 = vrot.lane.b32.xlu1 %v2975_v61, %s3050_s30 }
 0xb7d   :  { %v852_v62 = vpop.permute.xlu0 %851 }
 0xb7e   :  { %v854_v63 = vmul.f32 %v852_v62, %v834_v45 }
 0xb80   :  { %v959_v3 = vrot.slane %v854_v63, 3  ;;  %1061 = vrot.lane.b32.xlu1 %v854_v63, %s3051_s4 }
 0xb82   :  { %960 = vrot.lane.b32.xlu0 %v959_v3, %s3051_s4 }
 0xb8d   :  { %v955_v6 = vpop.permute.xlu1 %954 }
 0xb8e   :  { %v957_v7 = vmul.f32 %v955_v6, %v940_v49 }
 0xb90   :  { %v1065_v9 = vrot.slane %v957_v7, 5  ;;  %v1888_v10 = vrot.slane %v957_v7, 6 }
 0xb92   :  { %v3266_v12 = vsel %vm1903_vm5, %v1902_v11, %v1888_v10  ;;  %1066 = vrot.lane.b32.xlu0 %v1065_v9, %s3050_s30 }
 0xbf2   :  { %v1062_v43 = vpop.permute.xlu1 %1061 }
 0xbf4   :  { %v961_v13 = vpop.permute.xlu0 %960 }
 0xbf5   :  { %2504 = vmatmul.mubr.msk.f32.vlgmr.msra.gmra.mrb[10].mxu0 %vm253_vm2, %v961_v13 }
 0xbf6   :  { %2810 = vmatpush3.bf16.msra.mxu0 %v3141_v60  ;;  %2522 = vmatprep.mubr.msk.f32.mxu0 %vm3048_vm0, %v3049_v1 }
 0xbf7   :  { %2811 = vmatprep.subr.bf16.mxu0 %v3047_v0 }
 0xbfa   :  { %2813 = vmatpush3.bf16.msra.mxu0 %v3145_v2 }
 0xbfb   :  { %2814 = vmatprep.subr.bf16.mxu0 %v3047_v0 }
 0xbfe   :  { %2816 = vmatpush3.bf16.msra.mxu0 %v3151_v5 }
 0xbff   :  { %2817 = vmatprep.subr.bf16.mxu0 %v3047_v0 }
 0xc02   :  { %2819 = vmatpush3.bf16.msra.mxu0 %v3155_v8 }
 0xc03   :  { %2838 = vmatprep.subr.bf16.mxu0 %v3047_v0 }
 0xc04   :  { %v1067_v15 = vpop.permute.xlu0 %1066 }
 0xc05   :  { %v1069_v17 = vsel %vm253_vm2, %v1062_v43, %v1067_v15 }
 0xc06   :  { %v1071_v18 = vrot.slane %v1069_v17, 3 }
 0xc08   :  { %2523 = vmatmul.mubr.msk.f32.vlgmr.msra.gmra.mrb[12].mxu0 %vm452_vm3, %v1071_v18 }
 0xc09   :  { %2840 = vmatpush3.bf16.msra.mxu0 %v3095_v16  ;;  %2563 = vmatprep.mubr.msk.f32.mxu0 %vm3048_vm0, %v3049_v1 }
 0xc0a   :  { %2841 = vmatprep.subr.bf16.mxu0 %v3047_v0 }
 0xc0d   :  { %2843 = vmatpush3.bf16.msra.mxu0 %v3107_v35 }
 0xc0e   :  { %2844 = vmatprep.subr.bf16.mxu0 %v3047_v0 }
 0xcc8   :  { %v1030_v19 = vpop.f32.mrb[10].mxu0 }
 0xcc9   :  { %v1035_v20 = vrot.slane %v1030_v19, 4  ;;  %v2505_v21 = vpop.f32.mrb[11].mxu0 }
 0xccb   :  { %v1037_v22 = vadd.f32 %v1035_v20, %v3131_v44 }
 0xccd   :  { %2976 = vtanh.f32 %v1037_v22 }
 0xcd7   :  { %v2977_v23 = vpop.eup %2976 }
 0xcd8   :  { %1046 = vrot.lane.b32.xlu1 %v2977_v23, %s3050_s30  ;;  %v1039_v28 = vmul.f32 0.5, %v2977_v23 }
 0xcda   :  { %v1040_v29 = vadd.f32 0.5, %v1039_v28 }
 0xcdb   :  { %v1140_v24 = vpop.f32.mrb[12].mxu0 }
 0xcdc   :  { %v1141_v25 = vadd.f32 %v1140_v24, %v3176_v14  ;;  %v2524_v26 = vpop.f32.mrb[13].mxu0  ;;  %v1044_v38 = vmul.f32 %v1042_v37, %v1040_v29 }
 0xcde   :  { %2978 = vtanh.f32 %v1141_v25 }
 0xce8   :  { %v2979_v27 = vpop.eup %2978 }
 0xce9   :  { %1149 = vrot.lane.b32.xlu0 %v2979_v27, %s3050_s30  ;;  %v1145_v32 = vmul.f32 0.5, %v2979_v27 }
 0xceb   :  { %v1146_v33 = vadd.f32 0.5, %v1145_v32 }
 0xced   :  { %v1147_v42 = vmul.f32 %v1146_v33, %v3258_v59 }
 0xd4a   :  { %v1047_v30 = vpop.permute.xlu1 %1046 }
 0xd4b   :  { %v1049_v31 = vmul.f32 %v1047_v30, %v1040_v29 }
 0xd4d   :  { %1051 = vrot.lane.b32.xlu1 %v1049_v31, %s3051_s4 }
 0xd5b   :  { %v1150_v34 = vpop.permute.xlu0 %1149 }
 0xd5c   :  { %v1152_v36 = vmul.f32 %v1150_v34, %v1146_v33 }
 0xd5e   :  { %1154 = vrot.lane.b32.xlu0 %v1152_v36, %s3051_s4 }
 0xdbf   :  { %v1052_v39 = vpop.permute.xlu1 %1051 }
 0xdc0   :  { %v3295_v40 = vadd.f32 %v1052_v39, %v1044_v38 }
 0xdc2   :  { %2980 = vtanh.f32 %v3295_v40  ;;  %v1248_v19 = vrot.slane %v3295_v40, 7 }
 0xdcc   :  { %v2981_v41 = vpop.eup %2980 }
 0xdcd   :  { %1057 = vrot.lane.b32.xlu1 %v2981_v41, %s3050_s30 }
 0xdd0   :  { %v1155_v45 = vpop.permute.xlu0 %1154 }
 0xdd1   :  { %v3300_v46 = vadd.f32 %v1155_v45, %v1147_v42 }
 0xdd3   :  { %2982 = vtanh.f32 %v3300_v46 }
 0xddd   :  { %v2983_v47 = vpop.eup %2982 }
 0xdde   :  { %1160 = vrot.lane.b32.xlu0 %v2983_v47, %s3050_s30 }
 0xe3f   :  { %v1058_v48 = vpop.permute.xlu1 %1057 }
 0xe40   :  { %v1060_v49 = vmul.f32 %v1058_v48, %v1040_v29 }
 0xe42   :  { %v1165_v50 = vrot.slane %v1060_v49, 4  ;;  %1267 = vrot.lane.b32.xlu0 %v1060_v49, %s3051_s4 }
 0xe44   :  { %1166 = vrot.lane.b32.xlu1 %v1165_v50, %s3051_s4 }
 0xe50   :  { %v1161_v51 = vpop.permute.xlu0 %1160 }
 0xe51   :  { %v1163_v52 = vmul.f32 %v1161_v51, %v1146_v33 }
 0xe53   :  { %v1271_v53 = vrot.slane %v1163_v52, 4  ;;  %v1890_v54 = vrot.slane %v1163_v52, 5 }
 0xe55   :  { %v3307_v55 = vsel %vm1905_vm6, %v3266_v12, %v1890_v54  ;;  %1272 = vrot.lane.b32.xlu1 %v1271_v53, %s3050_s30 }
 0xeb4   :  { %v1268_v57 = vpop.permute.xlu0 %1267 }
 0xeb6   :  { %v1167_v56 = vpop.permute.xlu1 %1166 }
 0xeb7   :  { %2534 = vmatmul.mubr.msk.f32.vlgmr.msra.gmra.mrb[8].mxu1 %vm253_vm2, %v1167_v56 }
 0xeb8   :  { %2828 = vmatpush3.bf16.msra.mxu1 %v3141_v60  ;;  %2552 = vmatprep.mubr.msk.f32.mxu1 %vm3048_vm0, %v3049_v1 }
 0xeb9   :  { %2829 = vmatprep.subr.bf16.mxu1 %v3047_v0 }
 0xebc   :  { %2831 = vmatpush3.bf16.msra.mxu1 %v3145_v2 }
 0xebd   :  { %2832 = vmatprep.subr.bf16.mxu1 %v3047_v0 }
 0xec0   :  { %2834 = vmatpush3.bf16.msra.mxu1 %v3151_v5 }
 0xec1   :  { %2835 = vmatprep.subr.bf16.mxu1 %v3047_v0 }
 0xec4   :  { %2837 = vmatpush3.bf16.msra.mxu1 %v3155_v8 }
 0xec5   :  { %2856 = vmatprep.subr.bf16.mxu1 %v3047_v0 }
 0xec7   :  { %v1273_v58 = vpop.permute.xlu1 %1272 }
 0xec8   :  { %v1275_v59 = vsel %vm253_vm2, %v1268_v57, %v1273_v58 }
 0xec9   :  { %v1277_v61 = vrot.slane %v1275_v59, 4 }
 0xecb   :  { %2553 = vmatmul.mubr.msk.f32.vlgmr.msra.gmra.mrb[10].mxu1 %vm452_vm3, %v1277_v61 }
 0xecc   :  { %2858 = vmatpush3.bf16.msra.mxu1 %v3095_v16  ;;  %2593 = vmatprep.mubr.msk.f32.mxu1 %vm3048_vm0, %v3049_v1 }
 0xecd   :  { %2859 = vmatprep.subr.bf16.mxu1 %v3047_v0 }
 0xed0   :  { %2861 = vmatpush3.bf16.msra.mxu1 %v3107_v35 }
 0xed1   :  { %2862 = vmatprep.subr.bf16.mxu1 %v3047_v0 }
 0xf8a   :  { %v1236_v62 = vpop.f32.mrb[8].mxu1 }
 0xf8b   :  { %v1241_v63 = vrot.slane %v1236_v62, 3  ;;  %v2535_v3 = vpop.f32.mrb[9].mxu1 }
 0xf8d   :  { %v1243_v4 = vadd.f32 %v1241_v63, %v3131_v44 }
 0xf8f   :  { %2984 = vtanh.f32 %v1243_v4 }
 0xf99   :  { %v2985_v6 = vpop.eup %2984 }
 0xf9a   :  { %1252 = vrot.lane.b32.xlu0 %v2985_v6, %s3050_s30  ;;  %v1245_v35 = vmul.f32 0.5, %v2985_v6 }
 0xf9c   :  { %v1246_v11 = vadd.f32 0.5, %v1245_v35 }
 0xf9e   :  { %v1346_v7 = vpop.f32.mrb[10].mxu1  ;;  %v1250_v20 = vmul.f32 %v1248_v19, %v1246_v11 }
 0xf9f   :  { %v1347_v16 = vadd.f32 %v1346_v7, %v3176_v14  ;;  %v2554_v9 = vpop.f32.mrb[11].mxu1 }
 0xfa1   :  { %2986 = vtanh.f32 %v1347_v16 }
 0xfab   :  { %v2987_v10 = vpop.eup %2986 }
 0xfac   :  { %1355 = vrot.lane.b32.xlu1 %v2987_v10, %s3050_s30  ;;  %v1351_v43 = vmul.f32 0.5, %v2987_v10 }
 0xfae   :  { %v1352_v15 = vadd.f32 0.5, %v1351_v43 }
 0xfb0   :  { %v1353_v24 = vmul.f32 %v1352_v15, %v3300_v46 }
0x100c   :  { %v1253_v12 = vpop.permute.xlu0 %1252 }
0x100d   :  { %v1255_v13 = vmul.f32 %v1253_v12, %v1246_v11 }
0x100f   :  { %1257 = vrot.lane.b32.xlu0 %v1255_v13, %s3051_s4 }
0x101e   :  { %v1356_v17 = vpop.permute.xlu1 %1355 }
0x101f   :  { %v1358_v18 = vmul.f32 %v1356_v17, %v1352_v15 }
0x1021   :  { %1360 = vrot.lane.b32.xlu1 %v1358_v18, %s3051_s4 }
0x1081   :  { %v1258_v21 = vpop.permute.xlu0 %1257 }
0x1082   :  { %v3336_v22 = vadd.f32 %v1258_v21, %v1250_v20 }
0x1084   :  { %2988 = vtanh.f32 %v3336_v22  ;;  %v1454_v62 = vrot.slane %v3336_v22, 7 }
0x108e   :  { %v2989_v23 = vpop.eup %2988 }
0x108f   :  { %1263 = vrot.lane.b32.xlu0 %v2989_v23, %s3050_s30 }
0x1093   :  { %v1361_v25 = vpop.permute.xlu1 %1360 }
0x1094   :  { %v3341_v26 = vadd.f32 %v1361_v25, %v1353_v24 }
0x1096   :  { %2990 = vtanh.f32 %v3341_v26 }
0x10a0   :  { %v2991_v27 = vpop.eup %2990 }
0x10a1   :  { %1366 = vrot.lane.b32.xlu1 %v2991_v27, %s3050_s30 }
0x1101   :  { %v1264_v28 = vpop.permute.xlu0 %1263 }
0x1102   :  { %v1266_v29 = vmul.f32 %v1264_v28, %v1246_v11 }
0x1104   :  { %v1371_v30 = vrot.slane %v1266_v29, 5  ;;  %1473 = vrot.lane.b32.xlu1 %v1266_v29, %s3051_s4 }
0x1106   :  { %1372 = vrot.lane.b32.xlu0 %v1371_v30, %s3051_s4 }
0x1113   :  { %v1367_v31 = vpop.permute.xlu1 %1366 }
0x1114   :  { %v1369_v32 = vmul.f32 %v1367_v31, %v1352_v15 }
0x1116   :  { %v1477_v33 = vrot.slane %v1369_v32, 3  ;;  %v1892_v34 = vrot.slane %v1369_v32, 4 }
0x1118   :  { %v3348_v36 = vsel %vm1907_vm7, %v3307_v55, %v1892_v34  ;;  %1478 = vrot.lane.b32.xlu0 %v1477_v33, %s3050_s30 }
0x1176   :  { %v1474_v38 = vpop.permute.xlu1 %1473 }
0x1178   :  { %v1373_v37 = vpop.permute.xlu0 %1372 }
0x1179   :  { %2564 = vmatmul.mubr.msk.f32.vlgmr.msra.gmra.mrb[14].mxu0 %vm253_vm2, %v1373_v37 }
0x117a   :  { %2846 = vmatpush3.bf16.msra.mxu0 %v3141_v60  ;;  %2582 = vmatprep.mubr.msk.f32.mxu0 %vm3048_vm0, %v3049_v1 }
0x117b   :  { %2847 = vmatprep.subr.bf16.mxu0 %v3047_v0 }
0x117e   :  { %2849 = vmatpush3.bf16.msra.mxu0 %v3145_v2 }
0x117f   :  { %2850 = vmatprep.subr.bf16.mxu0 %v3047_v0 }
0x1182   :  { %2852 = vmatpush3.bf16.msra.mxu0 %v3151_v5 }
0x1183   :  { %2853 = vmatprep.subr.bf16.mxu0 %v3047_v0 }
0x1186   :  { %2855 = vmatpush3.bf16.msra.mxu0 %v3155_v8 }
0x1187   :  { %2874 = vmatprep.subr.bf16.mxu0 %v3047_v0 }
0x118a   :  { %v1479_v39 = vpop.permute.xlu0 %1478 }
0x118b   :  { %v1481_v40 = vsel %vm253_vm2, %v1474_v38, %v1479_v39 }
0x118c   :  { %v1483_v41 = vrot.slane %v1481_v40, 5 }
0x118e   :  { %2583 = vmatmul.mubr.msk.f32.vlgmr.msra.gmra.mrb[16].mxu0 %vm452_vm3, %v1483_v41 }
0x118f   :  { %2876 = vmatpush3.bf16.msra.mxu0 %v3141_v60  ;;  %2631 = vmatprep.mubr.msk.f32.mxu0 %vm3048_vm0, %v3049_v1 }
0x1190   :  { %2877 = vmatprep.subr.bf16.mxu0 %v3047_v0 }
0x1193   :  { %2879 = vmatpush3.bf16.msra.mxu0 %v3145_v2 }
0x1194   :  { %2880 = vmatprep.subr.bf16.mxu0 %v3047_v0 }
0x1197   :  { %2882 = vmatpush3.bf16.msra.mxu0 %v3151_v5 }
0x1198   :  { %2883 = vmatprep.subr.bf16.mxu0 %v3047_v0 }
0x119b   :  { %2885 = vmatpush3.bf16.msra.mxu0 %v3155_v8 }
0x119c   :  { %2892 = vmatprep.subr.bf16.mxu0 %v3047_v0 }
0x124c   :  { %v1442_v42 = vpop.f32.mrb[14].mxu0 }
0x124d   :  { %v1447_v45 = vrot.slane %v1442_v42, 2  ;;  %v2565_v46 = vpop.f32.mrb[15].mxu0 }
0x124f   :  { %v1449_v47 = vadd.f32 %v1447_v45, %v3131_v44 }
0x1251   :  { %2992 = vtanh.f32 %v1449_v47 }
0x125b   :  { %v2993_v48 = vpop.eup %2992 }
0x125c   :  { %1458 = vrot.lane.b32.xlu1 %v2993_v48, %s3050_s30  ;;  %v1451_v53 = vmul.f32 0.5, %v2993_v48 }
0x125e   :  { %v1452_v54 = vadd.f32 0.5, %v1451_v53 }
0x1260   :  { %v1456_v63 = vmul.f32 %v1454_v62, %v1452_v54 }
0x1261   :  { %v1552_v49 = vpop.f32.mrb[16].mxu0 }
0x1262   :  { %v1553_v50 = vadd.f32 %v1552_v49, %v3176_v14  ;;  %v2584_v51 = vpop.f32.mrb[17].mxu0 }
0x1264   :  { %2994 = vtanh.f32 %v1553_v50 }
0x126e   :  { %v2995_v52 = vpop.eup %2994 }
0x126f   :  { %1561 = vrot.lane.b32.xlu0 %v2995_v52, %s3050_s30  ;;  %v1557_v57 = vmul.f32 0.5, %v2995_v52 }
0x1271   :  { %v1558_v58 = vadd.f32 0.5, %v1557_v57 }
0x1273   :  { %v1559_v7 = vmul.f32 %v1558_v58, %v3341_v26 }
0x12ce   :  { %v1459_v55 = vpop.permute.xlu1 %1458 }
0x12cf   :  { %v1461_v56 = vmul.f32 %v1459_v55, %v1452_v54 }
0x12d1   :  { %1463 = vrot.lane.b32.xlu1 %v1461_v56, %s3051_s4 }
0x12e1   :  { %v1562_v59 = vpop.permute.xlu0 %1561 }
0x12e2   :  { %v1564_v61 = vmul.f32 %v1562_v59, %v1558_v58 }
0x12e4   :  { %1566 = vrot.lane.b32.xlu0 %v1564_v61, %s3051_s4 }
0x1343   :  { %v1464_v3 = vpop.permute.xlu1 %1463 }
0x1344   :  { %v3381_v4 = vadd.f32 %v1464_v3, %v1456_v63 }
0x1346   :  { %2996 = vtanh.f32 %v3381_v4  ;;  %v1660_v37 = vrot.slane %v3381_v4, 7 }
0x1350   :  { %v2997_v6 = vpop.eup %2996 }
0x1351   :  { %1469 = vrot.lane.b32.xlu1 %v2997_v6, %s3050_s30 }
0x1356   :  { %v1567_v16 = vpop.permute.xlu0 %1566 }
0x1357   :  { %v3386_v9 = vadd.f32 %v1567_v16, %v1559_v7 }
0x1359   :  { %2998 = vtanh.f32 %v3386_v9 }
0x1363   :  { %v2999_v10 = vpop.eup %2998 }
0x1364   :  { %1572 = vrot.lane.b32.xlu0 %v2999_v10, %s3050_s30 }
0x13c3   :  { %v1470_v35 = vpop.permute.xlu1 %1469 }
0x13c4   :  { %v1472_v11 = vmul.f32 %v1470_v35, %v1452_v54  ;;  %v58_v35 = vld [vmem:[#allocation2 + $0xf0] sm:$0xff] }
0x13c6   :  { %v1577_v12 = vrot.slane %v1472_v11, 6  ;;  %1679 = vrot.lane.b32.xlu0 %v1472_v11, %s3051_s4  ;;  %v59_v11 = vld [vmem:[#allocation2 + $0xf8] sm:$0xff] }
0x13c8   :  { %1578 = vrot.lane.b32.xlu1 %v1577_v12, %s3051_s4  ;;  %v60_v12 = vld [vmem:[#allocation2 + $0x100] sm:$0xff] }
0x13d6   :  { %v1573_v13 = vpop.permute.xlu0 %1572 }
0x13d7   :  { %v1575_v43 = vmul.f32 %v1573_v13, %v1558_v58  ;;  %v2887_v13 = vpack.c.bf16 %v59_v11, %v58_v35  ;;  %v93_v35 = vld [vmem:[#allocation2 + $0x208] sm:$0xff] }
0x13d9   :  { %v1683_v15 = vrot.slane %v1575_v43, 2  ;;  %v1894_v17 = vrot.slane %v1575_v43, 3 }
0x13db   :  { %1684 = vrot.lane.b32.xlu1 %v1683_v15, %s3050_s30  ;;  %v3394_v18 = vsel %vm1909_vm8, %v3348_v36, %v1894_v17  ;;  %v62_v17 = vld [vmem:[#allocation2 + $0x110] sm:$0xff] }
0x1438   :  { %v1680_v20 = vpop.permute.xlu0 %1679 }
0x143a   :  { %v1579_v19 = vpop.permute.xlu1 %1578 }
0x143b   :  { %2594 = vmatmul.mubr.msk.f32.vlgmr.msra.gmra.mrb[12].mxu1 %vm253_vm2, %v1579_v19  ;;  %v64_v19 = vld [vmem:[#allocation2 + $0x120] sm:$0xff] }
0x143c   :  { %2864 = vmatpush3.bf16.msra.mxu1 %v3141_v60  ;;  %2612 = vmatprep.mubr.msk.f32.mxu1 %vm3048_vm0, %v3049_v1 }
0x143d   :  { %2865 = vmatprep.subr.bf16.mxu1 %v3047_v0 }
0x1440   :  { %2867 = vmatpush3.bf16.msra.mxu1 %v3145_v2 }
0x1441   :  { %2868 = vmatprep.subr.bf16.mxu1 %v3047_v0 }
0x1444   :  { %2870 = vmatpush3.bf16.msra.mxu1 %v3151_v5 }
0x1445   :  { %2871 = vmatprep.subr.bf16.mxu1 %v3047_v0 }
0x1448   :  { %2873 = vmatpush3.bf16.msra.mxu1 %v3155_v8 }
0x1449   :  { %2886 = vmatprep.subr.bf16.mxu1 %v3047_v0 }
0x144d   :  { %v1685_v21 = vpop.permute.xlu1 %1684 }
0x144e   :  { %v1687_v60 = vsel %vm253_vm2, %v1680_v20, %v1685_v21  ;;  %v65_v21 = vld [vmem:[#allocation2 + $0x128] sm:$0xff] }
0x144f   :  { %v1689_v22 = vrot.slane %v1687_v60, 6  ;;  %v2896_v60 = vpack.c.bf16 %v65_v21, %v64_v19 }
0x1451   :  { %2613 = vmatmul.mubr.msk.f32.vlgmr.msra.gmra.mrb[14].mxu1 %vm452_vm3, %v1689_v22  ;;  %v66_v22 = vld [vmem:[#allocation2 + $0x130] sm:$0xff] }
0x1452   :  { %2642 = vmatprep.mubr.msk.f32.mxu1 %vm3048_vm0, %v3049_v1  ;;  %2888 = vmatpush3.bf16.msra.mxu1 %v2887_v13 }
0x1453   :  { %2889 = vmatprep.subr.bf16.mxu1 %v3047_v0 }
0x150e   :  { %v1648_v2 = vpop.f32.mrb[12].mxu1 }
0x150f   :  { %v1653_v23 = vrot.slane %v1648_v2, 1  ;;  %v2595_v24 = vpop.f32.mrb[13].mxu1  ;;  %v67_v2 = vld [vmem:[#allocation2 + $0x138] sm:$0xff] }
0x1510   :  { %v2899_v24 = vpack.c.bf16 %v67_v2, %v66_v22 }
0x1511   :  { %v1655_v5 = vadd.f32 %v1653_v23, %v3131_v44 }
0x1513   :  { %3000 = vtanh.f32 %v1655_v5 }
0x151d   :  { %v3001_v25 = vpop.eup %3000 }
0x151e   :  { %1664 = vrot.lane.b32.xlu1 %v3001_v25, %s3050_s30  ;;  %v1657_v29 = vmul.f32 0.5, %v3001_v25  ;;  %v68_v25 = vld [vmem:[#allocation2 + $0x140] sm:$0xff] }
0x1520   :  { %v1658_v30 = vadd.f32 0.5, %v1657_v29  ;;  %v70_v29 = vld [vmem:[#allocation2 + $0x150] sm:$0xff] }
0x1522   :  { %v1662_v38 = vmul.f32 %v1660_v37, %v1658_v30  ;;  %v75_v37 = vld [vmem:[#allocation2 + $0x178] sm:$0xff] }
0x1524   :  { %v1758_v8 = vpop.f32.mrb[14].mxu1 }
0x1525   :  { %v1759_v26 = vadd.f32 %v1758_v8, %v3176_v14  ;;  %v2614_v27 = vpop.f32.mrb[15].mxu1  ;;  %v69_v8 = vld [vmem:[#allocation2 + $0x148] sm:$0xff] }
0x1526   :  { %v2902_v27 = vpack.c.bf16 %v69_v8, %v68_v25 }
0x1527   :  { %3002 = vtanh.f32 %v1759_v26 }
0x1531   :  { %v3003_v28 = vpop.eup %3002 }
0x1532   :  { %1767 = vrot.lane.b32.xlu0 %v3003_v28, %s3050_s30  ;;  %v1763_v33 = vmul.f32 0.5, %v3003_v28 }
0x1534   :  { %v1764_v44 = vadd.f32 0.5, %v1763_v33  ;;  %v72_v33 = vld [vmem:[#allocation2 + $0x160] sm:$0xff] }
0x1536   :  { %v1765_v42 = vmul.f32 %v1764_v44, %v3386_v9 }
0x1590   :  { %v1665_v31 = vpop.permute.xlu1 %1664 }
0x1591   :  { %v1667_v32 = vmul.f32 %v1665_v31, %v1658_v30 }
0x1593   :  { %1669 = vrot.lane.b32.xlu1 %v1667_v32, %s3051_s4 }
0x15a4   :  { %v1768_v34 = vpop.permute.xlu0 %1767 }
0x15a5   :  { %v1770_v36 = vmul.f32 %v1768_v34, %v1764_v44 }
0x15a7   :  { %1772 = vrot.lane.b32.xlu0 %v1770_v36, %s3051_s4  ;;  %v74_v36 = vld [vmem:[#allocation2 + $0x170] sm:$0xff] }
0x1605   :  { %v1670_v39 = vpop.permute.xlu1 %1669 }
0x1606   :  { %v1672_v40 = vadd.f32 %v1670_v39, %v1662_v38  ;;  %v2911_v38 = vpack.c.bf16 %v75_v37, %v74_v36  ;;  %v76_v39 = vld [vmem:[#allocation2 + $0x180] sm:$0xff] }
0x1608   :  { %3004 = vtanh.f32 %v1672_v40  ;;  %v77_v40 = vld [vmem:[#allocation2 + $0x188] sm:$0xff] }
0x1612   :  { %v3005_v41 = vpop.eup %3004 }
0x1613   :  { %1675 = vrot.lane.b32.xlu1 %v3005_v41, %s3050_s30  ;;  %v2914_v41 = vpack.c.bf16 %v77_v40, %v76_v39 }
0x1619   :  { %v1773_v45 = vpop.permute.xlu0 %1772 }
0x161a   :  { %v1775_v46 = vadd.f32 %v1773_v45, %v1765_v42  ;;  %v78_v42 = vld [vmem:[#allocation2 + $0x190] sm:$0xff]  ;;  %v79_v45 = vld [vmem:[#allocation2 + $0x198] sm:$0xff] }
0x161c   :  { %3006 = vtanh.f32 %v1775_v46 }
0x1626   :  { %v3007_v47 = vpop.eup %3006 }
0x1627   :  { %1778 = vrot.lane.b32.xlu0 %v3007_v47, %s3050_s30  ;;  %v81_v47 = vld [vmem:[#allocation2 + $0x1a8] sm:$0xff] }
0x1685   :  { %v1676_v48 = vpop.permute.xlu1 %1675 }
0x1686   :  { %v1678_v49 = vmul.f32 %v1676_v48, %v1658_v30  ;;  %v71_v30 = vld [vmem:[#allocation2 + $0x158] sm:$0xff] }
0x1687   :  { %v2905_v31 = vpack.c.bf16 %v71_v30, %v70_v29 }
0x1688   :  { %1783 = vrot.lane.b32.xlu0 %v1678_v49, %s3051_s4  ;;  %v82_v49 = vld [vmem:[#allocation2 + $0x1b0] sm:$0xff] }
0x1699   :  { %v1779_v50 = vpop.permute.xlu0 %1778 }
0x169a   :  { %v1781_v51 = vmul.f32 %v1779_v50, %v1764_v44  ;;  %v73_v44 = vld [vmem:[#allocation2 + $0x168] sm:$0xff]  ;;  %v83_v50 = vld [vmem:[#allocation2 + $0x1b8] sm:$0xff] }
0x169b   :  { %v2908_v34 = vpack.c.bf16 %v73_v44, %v72_v33 }
0x169c   :  { %v1787_v52 = vrot.slane %v1781_v51, 1  ;;  %v1896_v53 = vrot.slane %v1781_v51, 2  ;;  %v2923_v51 = vpack.c.bf16 %v83_v50, %v82_v49 }
0x169e   :  { %1788 = vrot.lane.b32.xlu1 %v1787_v52, %s3050_s30  ;;  %v1912_v54 = vsel %vm1911_vm9, %v3394_v18, %v1896_v53  ;;  %v63_v18 = vld [vmem:[#allocation2 + $0x118] sm:$0xff]  ;;  %v84_v52 = vld [vmem:[#allocation2 + $0x1c0] sm:$0xff]  ;;  %v85_v53 = vld [vmem:[#allocation2 + $0x1c8] sm:$0xff] }
0x169f   :  { %v2893_v20 = vpack.c.bf16 %v63_v18, %v62_v17  ;;  %v2180_v17 = vld [vmem:[%s3466_s2 + $0x5] ss:$0 sm:$0xff] }
0x16fa   :  { %v1784_v55 = vpop.permute.xlu0 %1783 }
0x1710   :  { %v1789_v56 = vpop.permute.xlu1 %1788 }
0x1711   :  { %v1791_v57 = vsel %vm253_vm2, %v1784_v55, %v1789_v56  ;;  %v86_v55 = vld [vmem:[#allocation2 + $0x1d0] sm:$0xff]  ;;  %v87_v56 = vld [vmem:[#allocation2 + $0x1d8] sm:$0xff] }
0x1712   :  { %v1793_v58 = vrot.slane %v1791_v57, 7  ;;  %v2929_v57 = vpack.c.bf16 %v87_v56, %v86_v55 }
0x1714   :  { %2632 = vmatmul.mubr.msk.f32.vlgmr.msra.gmra.mrb[18].mxu0 %vm452_vm3, %v1793_v58  ;;  %v2177_v58 = vld [vmem:[%s3466_s2 + $0x3] ss:$0 sm:$0xff] }
0x1715   :  { %2677 = vmatprep.mubr.msk.f32.mxu0 %vm3048_vm0, %v3049_v1  ;;  %2894 = vmatpush3.bf16.msra.mxu0 %v2893_v20 }
0x1716   :  { %2895 = vmatprep.subr.bf16.mxu0 %v3047_v0 }
0x1719   :  { %2897 = vmatpush3.bf16.msra.mxu0 %v2896_v60 }
0x171a   :  { %2898 = vmatprep.subr.bf16.mxu0 %v3047_v0 }
0x171d   :  { %2900 = vmatpush3.bf16.msra.mxu0 %v2899_v24 }
0x171e   :  { %2901 = vmatprep.subr.bf16.mxu0 %v3047_v0 }
0x1721   :  { %2903 = vmatpush3.bf16.msra.mxu0 %v2902_v27 }
0x1722   :  { %2904 = vmatprep.subr.bf16.mxu0 %v3047_v0 }
0x1725   :  { %2906 = vmatpush3.bf16.msra.mxu0 %v2905_v31 }
0x1726   :  { %2907 = vmatprep.subr.bf16.mxu0 %v3047_v0 }
0x1729   :  { %2909 = vmatpush3.bf16.msra.mxu0 %v2908_v34 }
0x172a   :  { %2910 = vmatprep.subr.bf16.mxu0 %v3047_v0 }
0x172d   :  { %2912 = vmatpush3.bf16.msra.mxu0 %v2911_v38 }
0x172e   :  { %2913 = vmatprep.subr.bf16.mxu0 %v3047_v0 }
0x1731   :  { %2915 = vmatpush3.bf16.msra.mxu0 %v2914_v41 }
0x17e7   :  { %v1862_v59 = vpop.f32.mrb[18].mxu0 }
0x17e8   :  { %v1863_v61 = vadd.f32 %v1862_v59, %v3176_v14  ;;  %v2633_v62 = vpop.f32.mrb[19].mxu0  ;;  %v61_v14 = vld [vmem:[#allocation2 + $0x108] sm:$0xff] }
0x17e9   :  { %v2890_v43 = vpack.c.bf16 %v61_v14, %v60_v12  ;;  %v2179_v12 = vld [vmem:[%s3466_s2 + $0x4] ss:$0 sm:$0xff] }
0x17ea   :  { %3008 = vtanh.f32 %v1863_v61 }
0x17eb   :  { %2891 = vmatpush3.bf16.msra.mxu1 %v2890_v43 }
0x17ec   :  { %2916 = vmatprep.subr.bf16.mxu1 %v3047_v0 }
0x17f4   :  { %v3009_v63 = vpop.eup %3008 }
0x17f5   :  { %1871 = vrot.lane.b32.xlu0 %v3009_v63, %s3050_s30  ;;  %v1867_v3 = vmul.f32 0.5, %v3009_v63 }
0x17f7   :  { %v1868_v4 = vadd.f32 0.5, %v1867_v3  ;;  %v88_v3 = vld [vmem:[#allocation2 + $0x1e0] sm:$0xff] }
0x17f9   :  { %v1869_v16 = vmul.f32 %v1868_v4, %v1775_v46  ;;  %v80_v46 = vld [vmem:[#allocation2 + $0x1a0] sm:$0xff] }
0x17fa   :  { %v2920_v48 = vpack.c.bf16 %v81_v47, %v80_v46 }
0x1867   :  { %v1872_v6 = vpop.permute.xlu0 %1871 }
0x1868   :  { %v1874_v7 = vmul.f32 %v1872_v6, %v1868_v4 }
0x186a   :  { %1876 = vrot.lane.b32.xlu1 %v1874_v7, %s3051_s4  ;;  %v90_v7 = vld [vmem:[#allocation2 + $0x1f0] sm:$0xff] }
0x18dc   :  { %v1877_v9 = vpop.permute.xlu1 %1876 }
0x18dd   :  { %v1879_v10 = vadd.f32 %v1877_v9, %v1869_v16  ;;  %v91_v16 = vld [vmem:[#allocation2 + $0x1f8] sm:$0xff] }
0x18de   :  { %v2935_v9 = vpack.c.bf16 %v91_v16, %v90_v7 }
0x18df   :  { %3010 = vtanh.f32 %v1879_v10  ;;  %v92_v10 = vld [vmem:[#allocation2 + $0x200] sm:$0xff] }
0x18e0   :  { %v2938_v11 = vpack.c.bf16 %v93_v35, %v92_v10 }
0x18e9   :  { %v3011_v15 = vpop.eup %3010 }
0x18ea   :  { %1882 = vrot.lane.b32.xlu0 %v3011_v15, %s3050_s30 }
0x195c   :  { %v1883_v23 = vpop.permute.xlu0 %1882 }
0x195d   :  { %v1885_v5 = vmul.f32 %v1883_v23, %v1868_v4  ;;  %v89_v4 = vld [vmem:[#allocation2 + $0x1e8] sm:$0xff] }
0x195e   :  { %v2932_v6 = vpack.c.bf16 %v89_v4, %v88_v3 }
0x195f   :  { %v1899_v26 = vrot.slane %v1885_v5, 1 }
0x1961   :  { %v1914_v28 = vsel %vm1913_vm10, %v1912_v54, %v1899_v26  ;;  %v2926_v54 = vpack.c.bf16 %v85_v53, %v84_v52 }
0x1962   :  { %1920 = vrot.lane.b32.xlu1 %v1914_v28, %s3051_s4 }
0x19d4   :  { %v1921_v32 = vpop.permute.xlu1 %1920 }
0x19d5   :  { %2643 = vmatmul.mubr.msk.f32.vlgmr.msra.gmra.mrb[16].mxu1 %vm253_vm2, %v1921_v32 }
0x19d6   :  { %2712 = vmatprep.mubr.msk.f32.mxu1 %vm3048_vm0, %v3049_v1  ;;  %v2917_v1 = vpack.c.bf16 %v79_v45, %v78_v42 }
0x19d8   :  { %2918 = vmatpush3.bf16.msra.mxu1 %v2917_v1 }
0x19d9   :  { %2919 = vmatprep.subr.bf16.mxu1 %v3047_v0 }
0x19dc   :  { %2921 = vmatpush3.bf16.msra.mxu1 %v2920_v48 }
0x19dd   :  { %2922 = vmatprep.subr.bf16.mxu1 %v3047_v0 }
0x19e0   :  { %2924 = vmatpush3.bf16.msra.mxu1 %v2923_v51 }
0x19e1   :  { %2925 = vmatprep.subr.bf16.mxu1 %v3047_v0 }
0x19e4   :  { %2927 = vmatpush3.bf16.msra.mxu1 %v2926_v54 }
0x19e5   :  { %2928 = vmatprep.subr.bf16.mxu1 %v3047_v0 }
0x19e8   :  { %2930 = vmatpush3.bf16.msra.mxu1 %v2929_v57 }
0x19e9   :  { %2931 = vmatprep.subr.bf16.mxu1 %v3047_v0 }
0x19ec   :  { %2933 = vmatpush3.bf16.msra.mxu1 %v2932_v6 }
0x19ed   :  { %2934 = vmatprep.subr.bf16.mxu1 %v3047_v0 }
0x19f0   :  { %2936 = vmatpush3.bf16.msra.mxu1 %v2935_v9 }
0x19f1   :  { %2937 = vmatprep.subr.bf16.mxu1 %v3047_v0 }
0x19f4   :  { %2939 = vmatpush3.bf16.msra.mxu1 %v2938_v11 }
0x1aa8   :  { %v1990_v59 = vpop.f32.mrb[16].mxu1 }
0x1aa9   :  { %v1991_v61 = vadd.f32 %v2177_v58, %v1990_v59  ;;  %v2644_v62 = vpop.f32.mrb[17].mxu1 }
0x1aab   :  { %3012 = vtanh.f32 %v1991_v61 }
0x1ab5   :  { %v3013_v63 = vpop.eup %3012 }
0x1ab6   :  { %2678 = vmatmul.mubr.f32.vlgmr.msra.gmra.mrb[20].mxu0 %v3013_v63 }
0x1b89   :  { %v2065_v13 = vpop.f32.mrb[20].mxu0 }
0x1b8a   :  { %v2066_v14 = vadd.f32 %v2179_v12, %v2065_v13  ;;  %v2679_v43 = vpop.f32.mrb[21].mxu0 }
0x1b8c   :  { %3014 = vtanh.f32 %v2066_v14 }
0x1b96   :  { %v3015_v15 = vpop.eup %3014 }
0x1b97   :  { %2713 = vmatmul.mubr.f32.vlgmr.msra.gmra.mrb[18].mxu1 %v3015_v15 }
0x1c6a   :  { %v2140_v18 = vpop.f32.mrb[18].mxu1 }
0x1c6b   :  { %v2141_v19 = vadd.f32 %v2180_v17, %v2140_v18  ;;  %v2714_v20 = vpop.f32.mrb[19].mxu1 }
0x1c6d   :  { %2144 = vmax.xlane.f32.xlu0 %v2141_v19 }
0x1cfa   :  { %v2145_v0 = vpop.xlane.xlu0 %2144 }
0x1cfb   :  { %v2146_v21 = vsub.f32 %v2141_v19, %v2145_v0 }
0x1cfd   :  { %v2147_v60 = vmul.f32 1.442695, %v2146_v21 }
0x1cff   :  { %3016 = vpow2.f32 %v2147_v60 }
0x1d09   :  { %v3017_v22 = vpop.eup %3016 }
0x1d0a   :  { %2149 = vadd.xlane.f32.xlu1 %v3017_v22 }
0x1d97   :  { %v2150_v2 = vpop.xlane.xlu1 %2149 }
0x1d98   :  { %3018 = vrcp.f32 %v2150_v2 }
0x1da2   :  { %v3019_v23 = vpop.eup %3018 }
0x1da3   :  { %v2152_v24 = vmul.f32 %v3019_v23, %v3017_v22 }
0x1da5   :  { %2153 = vst [vmem:[%s3467_s3] sm:$0xff] %v2152_v24 }
0x1da6   :  { %2158 = vsyncpa [#allocation3], 1 }

</bundles_post_ra>
